<compile_context>
chip_gen: v6e
topology: v6e:2x2x1
jax: 0.10.0
libtpu: 0.0.40
codegen_flags: <defaults>
</compile_context>

<pallas_src>
import math
from functools import partial

import jax
import jax.numpy as jnp
from jax import lax
from jax.experimental import pallas as pl
from jax.experimental.pallas import tpu as pltpu

_BN_EPS = 1e-5            # PyTorch BatchNorm2d default eps
_TN_MAX = 256             # C_out tile: matches 256-wide MXU on v6e/v7x
_TK_MAX = 2304            # max contraction depth per grid step


def _tpu_budget():
    """(max M-tile rows, scoped-VMEM limit) per chip generation."""
    try:
        cap = pltpu.get_tpu_info().vmem_capacity_bytes
    except Exception:
        cap = 64 * 1024 * 1024
    if cap >= 96 * 1024 * 1024:        # v5e / v6e: 128 MiB VMEM
        return 2048, 96 * 1024 * 1024
    return 1024, 48 * 1024 * 1024      # v7x: 64 MiB per TensorCore


_TM_MAX, _VMEM_LIMIT = _tpu_budget()


def _round_up(a, b):
    return (a + b - 1) // b * b


def _choose_k(K):
    """Return (tk, Kp): tk a multiple of 128, Kp = nk*tk >= K, balanced padding."""
    kp128 = _round_up(K, 128)
    if kp128 <= _TK_MAX:
        return kp128, kp128
    nk = -(-kp128 // _TK_MAX)
    tk = _round_up(-(-kp128 // nk), 128)
    return tk, tk * nk


# ---------------------------------------------------------------------------
# Pass A: tiled bf16 matmul + per-M-group per-channel sum / sum-of-squares
# ---------------------------------------------------------------------------

def _matmul_stats_kernel(x_ref, w_ref, y_ref, sum_ref, sq_ref, *scratch, nk):
    def finalize(acc):
        y_ref[...] = acc.astype(y_ref.dtype)
        s = jnp.sum(acc, axis=0, keepdims=True)
        q = jnp.sum(acc * acc, axis=0, keepdims=True)
        # stats block is (1, 8, tn); broadcast the (1, tn) row across sublanes
        sum_ref[...] = jnp.broadcast_to(s, sum_ref.shape)
        sq_ref[...] = jnp.broadcast_to(q, sq_ref.shape)

    if nk == 1:
        # single-K-step layers: no f32 accumulator round trip
        finalize(jnp.dot(x_ref[...], w_ref[...],
                         preferred_element_type=jnp.float32))
        return

    acc_ref = scratch[0]
    k = pl.program_id(2)

    @pl.when(k == 0)
    def _():
        acc_ref[...] = jnp.zeros_like(acc_ref)

    acc_ref[...] += jnp.dot(x_ref[...], w_ref[...],
                            preferred_element_type=jnp.float32)

    @pl.when(k == nk - 1)
    def _():
        finalize(acc_ref[...])


def _matmul_stats(x, w, tm, tn, tk):
    """x: [Mp, Kp] bf16, w: [Kp, Cp] bf16 ->
       (y [Mp, Cp] bf16, sum [nm, 8, Cp] f32, sumsq [nm, 8, Cp] f32)."""
    Mp, Kp = x.shape
    Cp = w.shape[1]
    nm, nn, nk = Mp // tm, Cp // tn, Kp // tk

    flops = 2 * Mp * Kp * Cp
    bytes_accessed = (x.size * 2 * nn + w.size * 2 * nm + Mp * Cp * 2
                      + 2 * nm * 8 * Cp * 4)

    kernel = partial(_matmul_stats_kernel, nk=nk)
    scratch = [] if nk == 1 else [pltpu.VMEM((tm, tn), jnp.float32)]

    return pl.pallas_call(
        kernel,
        out_shape=(jax.ShapeDtypeStruct((Mp, Cp), jnp.bfloat16),
                   jax.ShapeDtypeStruct((nm, 8, Cp), jnp.float32),
                   jax.ShapeDtypeStruct((nm, 8, Cp), jnp.float32)),
        grid_spec=pltpu.PrefetchScalarGridSpec(
            num_scalar_prefetch=0,
            grid=(nn, nm, nk),
            in_specs=[
                pl.BlockSpec((tm, tk), lambda n, m, k: (m, k)),
                pl.BlockSpec((tk, tn), lambda n, m, k: (k, n)),
            ],
            out_specs=(
                pl.BlockSpec((tm, tn), lambda n, m, k: (m, n)),
                pl.BlockSpec((1, 8, tn), lambda n, m, k: (m, 0, n)),
                pl.BlockSpec((1, 8, tn), lambda n, m, k: (m, 0, n)),
            ),
            scratch_shapes=scratch,
        ),
        compiler_params=pltpu.CompilerParams(
            # stats are per-m now -> no cross-m carry -> m can be parallel
            # (both v7x TensorCores active); only the k reduction is arbitrary.
            dimension_semantics=("parallel", "parallel", "arbitrary"),
            vmem_limit_bytes=_VMEM_LIMIT),
        cost_estimate=pl.CostEstimate(flops=flops, transcendentals=0,
                                      bytes_accessed=bytes_accessed),
    )(x, w)


# ---------------------------------------------------------------------------
# Pass B: BatchNorm apply (+ residual) (+ ReLU), tiled over (M, C), bf16 out
# ---------------------------------------------------------------------------

def _bn_math(y, s, q, g, b, res, inv_m, relu):
    mean = s * inv_m
    var = jnp.maximum(q * inv_m - mean * mean, 0.0)   # biased (batch) variance
    out = (y - mean) * lax.rsqrt(var + _BN_EPS) * g + b
    if res is not None:
        out = out + res
    if relu:
        out = jnp.maximum(out, 0.0)
    return out


def _bn_kernel(y_ref, s_ref, q_ref, g_ref, b_ref, o_ref, *, inv_m, relu, cw):
    y = y_ref[...][:, :cw].astype(jnp.float32)
    o_ref[...] = _bn_math(y, s_ref[...], q_ref[...], g_ref[...], b_ref[...],
                          None, inv_m, relu).astype(o_ref.dtype)


def _bn_res_kernel(y_ref, s_ref, q_ref, g_ref, b_ref, r_ref, o_ref, *,
                   inv_m, relu, cw):
    y = y_ref[...][:, :cw].astype(jnp.float32)
    r = r_ref[...].astype(jnp.float32)
    o_ref[...] = _bn_math(y, s_ref[...], q_ref[...], g_ref[...], b_ref[...],
                          r, inv_m, relu).astype(o_ref.dtype)


def _bn_apply(y, ssum, ssq, gamma, beta, res, m_true, tm, tnb, apply_relu):
    Mp, Cp = y.shape
    cout = ssum.shape[1]
    ncb = cout // tnb          # channel grid
    ycw = Cp // ncb            # y channel tile (may exceed tnb when cout=64)
    nm = Mp // tm

    in_specs = [
        pl.BlockSpec((tm, ycw), lambda m, n: (m, n)),
        pl.BlockSpec((1, tnb), lambda m, n: (0, n)),
        pl.BlockSpec((1, tnb), lambda m, n: (0, n)),
        pl.BlockSpec((1, tnb), lambda m, n: (0, n)),
        pl.BlockSpec((1, tnb), lambda m, n: (0, n)),
    ]
    args = [y, ssum, ssq, gamma.reshape(1, cout), beta.reshape(1, cout)]
    kw = dict(inv_m=1.0 / m_true, relu=apply_relu, cw=tnb)
    if res is not None:
        in_specs.append(pl.BlockSpec((tm, tnb), lambda m, n: (m, n)))
        args.append(res)
        kernel = partial(_bn_res_kernel, **kw)
    else:
        kernel = partial(_bn_kernel, **kw)

    return pl.pallas_call(
        kernel,
        out_shape=jax.ShapeDtypeStruct((Mp, cout), jnp.bfloat16),
        grid_spec=pltpu.PrefetchScalarGridSpec(
            num_scalar_prefetch=0,
            grid=(nm, ncb),
            in_specs=in_specs,
            out_specs=pl.BlockSpec((tm, tnb), lambda m, n: (m, n)),
        ),
        compiler_params=pltpu.CompilerParams(
            dimension_semantics=("parallel", "parallel"),
            vmem_limit_bytes=_VMEM_LIMIT),
    )(*args)


# ---------------------------------------------------------------------------
# Conv + BN (+residual) (+ReLU) wrapper
# ---------------------------------------------------------------------------

def _im2col(x, kh, kw, stride, pad):
    """x: [N, H, W, C] bf16 -> patches [N*Ho*Wo, kh*kw*C] bf16, Ho, Wo."""
    N, H, W, C = x.shape
    xp = jnp.pad(x, ((0, 0), (pad, pad), (pad, pad), (0, 0)))
    Ho = (H + 2 * pad - kh) // stride + 1
    Wo = (W + 2 * pad - kw) // stride + 1
    taps = [xp[:, i:i + stride * Ho:stride, j:j + stride * Wo:stride, :]
            for i in range(kh) for j in range(kw)]
    patches = taps[0] if len(taps) == 1 else jnp.concatenate(taps, axis=-1)
    return patches.reshape(N * Ho * Wo, kh * kw * C), Ho, Wo


def conv_bn(x, w, gamma, beta, *, stride, pad, apply_relu, residual=None):
    """Conv2d(bias=False) + BatchNorm2d(batch stats) (+residual) (+ReLU).  x: NHWC."""
    N = x.shape[0]
    cout, cin, kh, kw = w.shape

    # TODO(synk): implicit im2col (fold kh*kw taps into pass A's K grid axis
    # over the padded NHWC input) to remove the patch tensor HBM round trip.
    x = x.astype(jnp.bfloat16)
    patches, Ho, Wo = _im2col(x, kh, kw, stride, pad)
    M = N * Ho * Wo
    K = kh * kw * cin

    tk, Kp = _choose_k(K)
    tm = min(_TM_MAX, _round_up(M, 8))
    Mp = _round_up(M, tm)
    cout_p = max(cout, 128)            # lane-dense y stores / full MXU columns
    tn = min(_TN_MAX, cout_p)

    patches = jnp.pad(patches, ((0, Mp - M), (0, Kp - K)))
    # PyTorch weight [Cout, Cin, kh, kw] -> matmul weight [(i,j,c) = K, Cout_p]
    wmat = w.transpose(2, 3, 1, 0).reshape(K, cout).astype(jnp.bfloat16)
    wmat = jnp.pad(wmat, ((0, Kp - K), (0, cout_p - cout)))

    # Zero-padded rows/channels contribute 0 to sum/sumsq; stats divide by the
    # true M and padded channels are sliced away -> statistics are exact.
    y, s_part, q_part = _matmul_stats(patches, wmat, tm, tn, tk)
    ssum = jnp.sum(s_part[:, 0, :cout], axis=0, keepdims=True)   # (1, cout) f32
    ssq = jnp.sum(q_part[:, 0, :cout], axis=0, keepdims=True)

    res2 = None
    if residual is not None:
        res2 = residual.astype(jnp.bfloat16).reshape(M, cout)
        if Mp != M:
            res2 = jnp.pad(res2, ((0, Mp - M), (0, 0)))

    tnb = min(_TN_MAX, cout)
    out = _bn_apply(y, ssum, ssq, gamma, beta, res2, M, tm, tnb, apply_relu)
    return out[:M].reshape(N, Ho, Wo, cout)


def maxpool_3x3_s2(x):
    """MaxPool2d(kernel_size=3, stride=2, padding=1) as one fused reduce_window."""
    return lax.reduce_window(
        x, jnp.asarray(-jnp.inf, x.dtype), lax.max,
        window_dimensions=(1, 3, 3, 1), window_strides=(1, 2, 2, 1),
        padding=((0, 0), (1, 1), (1, 1), (0, 0)))


# ---------------------------------------------------------------------------
# Parameters (deterministic init, matching the PyTorch __init__)
# ---------------------------------------------------------------------------

def _init_conv(key, cout, cin, kh, kw):
    # kaiming_normal_(mode='fan_out', nonlinearity='relu')
    fan_out = cout * kh * kw
    std = math.sqrt(2.0 / fan_out)
    return jax.random.normal(key, (cout, cin, kh, kw), jnp.float32) * std


def make_params(key, num_input_images=1):
    params = {}
    key, k = jax.random.split(key)
    params["conv1"] = _init_conv(k, 64, num_input_images * 3, 7, 7)
    params["bn1"] = (jnp.ones(64, jnp.float32), jnp.zeros(64, jnp.float32))

    inplanes = 64
    layer_cfg = [(64, 2, 1), (128, 2, 2), (256, 2, 2), (512, 2, 2)]  # ResNet-18
    for li, (planes, nblocks, stride) in enumerate(layer_cfg, start=1):
        blocks = []
        for b in range(nblocks):
            s = stride if b == 0 else 1
            key, k1, k2 = jax.random.split(key, 3)
            blk = {
                "stride": s,
                "conv1": _init_conv(k1, planes, inplanes, 3, 3),
                "bn1": (jnp.ones(planes, jnp.float32),
                        jnp.zeros(planes, jnp.float32)),
                "conv2": _init_conv(k2, planes, planes, 3, 3),
                "bn2": (jnp.ones(planes, jnp.float32),
                        jnp.zeros(planes, jnp.float32)),
            }
            if s != 1 or inplanes != planes:
                key, kd = jax.random.split(key)
                blk["down_conv"] = _init_conv(kd, planes, inplanes, 1, 1)
                blk["down_bn"] = (jnp.ones(planes, jnp.float32),
                                  jnp.zeros(planes, jnp.float32))
            blocks.append(blk)
            inplanes = planes
        params[f"layer{li}"] = blocks
    return params


# ---------------------------------------------------------------------------
# Forward pass (mirrors ResNetEncoder.forward for num_layers=18)
# ---------------------------------------------------------------------------

def _basic_block(x, blk):
    out = conv_bn(x, blk["conv1"], *blk["bn1"],
                  stride=blk["stride"], pad=1, apply_relu=True)
    if "down_conv" in blk:
        identity = conv_bn(x, blk["down_conv"], *blk["down_bn"],
                           stride=blk["stride"], pad=0, apply_relu=False)
    else:
        identity = x
    # conv2 + bn2 + residual add + relu (residual/relu fused in the BN pass)
    return conv_bn(out, blk["conv2"], *blk["bn2"],
                   stride=1, pad=1, apply_relu=True, residual=identity)


def resnet_encoder_forward(params, input_image_nchw):
    # input normalization is trivial elementwise glue, kept in plain JAX
    x = (input_image_nchw - 0.45) / 0.225
    x = jnp.transpose(x, (0, 2, 3, 1)).astype(jnp.bfloat16)   # NCHW -> NHWC, bf16

    feats = []
    x = conv_bn(x, params["conv1"], *params["bn1"],
                stride=2, pad=3, apply_relu=True)
    feats.append(x)
    x = maxpool_3x3_s2(x)
    for name in ("layer1", "layer2", "layer3", "layer4"):
        for blk in params[name]:
            x = _basic_block(x, blk)
        feats.append(x)
    # back to NCHW / f32 to match the PyTorch output convention
    return [jnp.transpose(f, (0, 3, 1, 2)).astype(jnp.float32) for f in feats]


# ---------------------------------------------------------------------------

if __name__ == "__main__":
    key = jax.random.PRNGKey(0)
    pkey, xkey = jax.random.split(key)
    params = make_params(pkey)

    # small but non-degenerate input: batch=2, 3 channels (num_input_images=1), 64x64
    x = jax.random.uniform(xkey, (2, 3, 64, 64), jnp.float32)

    feats = resnet_encoder_forward(params, x)
    feats = jax.block_until_ready(feats)

    expected = [(2, 64, 32, 32), (2, 64, 16, 16), (2, 128, 8, 8),
                (2, 256, 4, 4), (2, 512, 2, 2)]
    assert [tuple(f.shape) for f in feats] == expected, \
        [tuple(f.shape) for f in feats]
    assert all(bool(jnp.all(jnp.isfinite(f))) for f in feats)
    # TODO(synk): BN running-stat updates (momentum buffers) are not modeled;
    # they do not affect the forward output in training mode.
    print("KERNEL_OK")
</pallas_src>

<mosaic_0001>
module attributes {stable_mosaic.version = 11 : i64} {
  func.func @_matmul_stats_kernel(%arg0: i32, %arg1: i32, %arg2: i32, %arg3: memref<1024x256xbf16, #tpu.memory_space<vmem>>, %arg4: memref<256x128xbf16, #tpu.memory_space<vmem>>, %arg5: memref<1024x128xbf16, #tpu.memory_space<vmem>>, %arg6: memref<1x8x128xf32, #tpu.memory_space<vmem>>, %arg7: memref<1x8x128xf32, #tpu.memory_space<vmem>>) attributes {dimension_semantics = [#tpu.dimension_semantics<parallel>, #tpu.dimension_semantics<parallel>, #tpu.dimension_semantics<arbitrary>], iteration_bounds = array<i64: 1, 2, 1>, scalar_prefetch = 0 : i64, scratch_operands = 0 : i64, tpu.core_type = #tpu.core_type<tc>, window_params = [{transform_indices = @transform_0, window_bounds = array<i64: 1024, 256>}, {transform_indices = @transform_1, window_bounds = array<i64: 256, 128>}, {transform_indices = @transform_2, window_bounds = array<i64: 1024, 128>}, {transform_indices = @transform_3, window_bounds = array<i64: 1, 8, 128>}, {transform_indices = @transform_4, window_bounds = array<i64: 1, 8, 128>}]} {
    %c0 = arith.constant 0 : index
    %c0_0 = arith.constant 0 : index
    %0 = vector.load %arg3[%c0, %c0_0] : memref<1024x256xbf16, #tpu.memory_space<vmem>>, vector<1024x256xbf16>
    %c0_1 = arith.constant 0 : index
    %c0_2 = arith.constant 0 : index
    %1 = vector.load %arg4[%c0_1, %c0_2] : memref<256x128xbf16, #tpu.memory_space<vmem>>, vector<256x128xbf16>
    %cst = arith.constant dense<0.000000e+00> : vector<1024x128xf32>
    %2 = tpu.matmul %0, %1, %cst {dimension_numbers = #tpu.dot_dimension_numbers<[1], [0], [0], [1], [0, 0, 1, 1], [], []>} : vector<1024x256xbf16>, vector<256x128xbf16>, vector<1024x128xf32> -> vector<1024x128xf32>
    %3 = arith.truncf %2 : vector<1024x128xf32> to vector<1024x128xbf16>
    %c0_3 = arith.constant 0 : index
    %c0_4 = arith.constant 0 : index
    %4 = vector.load %arg5[%c0_3, %c0_4] : memref<1024x128xbf16, #tpu.memory_space<vmem>>, vector<1024x128xbf16>
    tpu.vector_store %arg5[%c0_3, %c0_4], %3 {strides = array<i32>} : memref<1024x128xbf16, #tpu.memory_space<vmem>>, vector<1024x128xbf16>,
    %cst_5 = arith.constant dense<0.000000e+00> : vector<128xf32>
    %5 = vector.multi_reduction <add>, %2, %cst_5 [0] : vector<1024x128xf32> to vector<128xf32>
    %6 = vector.shape_cast %5 : vector<128xf32> to vector<1x128xf32>
    %7 = arith.mulf %2, %2 : vector<1024x128xf32>
    %cst_6 = arith.constant dense<0.000000e+00> : vector<128xf32>
    %8 = vector.multi_reduction <add>, %7, %cst_6 [0] : vector<1024x128xf32> to vector<128xf32>
    %9 = vector.shape_cast %8 : vector<128xf32> to vector<1x128xf32>
    %10 = vector.shape_cast %6 : vector<1x128xf32> to vector<1x1x128xf32>
    %11 = vector.broadcast %10 : vector<1x1x128xf32> to vector<1x8x128xf32>
    %c0_7 = arith.constant 0 : index
    %c0_8 = arith.constant 0 : index
    %c0_9 = arith.constant 0 : index
    %12 = vector.load %arg6[%c0_7, %c0_8, %c0_9] : memref<1x8x128xf32, #tpu.memory_space<vmem>>, vector<1x8x128xf32>
    tpu.vector_store %arg6[%c0_7, %c0_8, %c0_9], %11 {strides = array<i32>} : memref<1x8x128xf32, #tpu.memory_space<vmem>>, vector<1x8x128xf32>,
    %13 = vector.shape_cast %9 : vector<1x128xf32> to vector<1x1x128xf32>
    %14 = vector.broadcast %13 : vector<1x1x128xf32> to vector<1x8x128xf32>
    %c0_10 = arith.constant 0 : index
    %c0_11 = arith.constant 0 : index
    %c0_12 = arith.constant 0 : index
    %15 = vector.load %arg7[%c0_10, %c0_11, %c0_12] : memref<1x8x128xf32, #tpu.memory_space<vmem>>, vector<1x8x128xf32>
    tpu.vector_store %arg7[%c0_10, %c0_11, %c0_12], %14 {strides = array<i32>} : memref<1x8x128xf32, #tpu.memory_space<vmem>>, vector<1x8x128xf32>,
    return
  }
  func.func @transform_0(%arg0: i32, %arg1: i32, %arg2: i32) -> (i32, i32) {
    %c0_i32 = arith.constant 0 : i32
    return %arg1, %arg2 : i32, i32
  }
  func.func @transform_1(%arg0: i32, %arg1: i32, %arg2: i32) -> (i32, i32) {
    %c0_i32 = arith.constant 0 : i32
    return %arg2, %arg0 : i32, i32
  }
  func.func @transform_2(%arg0: i32, %arg1: i32, %arg2: i32) -> (i32, i32) {
    %c0_i32 = arith.constant 0 : i32
    return %arg1, %arg0 : i32, i32
  }
  func.func @transform_3(%arg0: i32, %arg1: i32, %arg2: i32) -> (i32, i32, i32) {
    %c0_i32 = arith.constant 0 : i32
    %c0_i32_0 = arith.constant 0 : i32
    return %arg1, %c0_i32, %arg0 : i32, i32, i32
  }
  func.func @transform_4(%arg0: i32, %arg1: i32, %arg2: i32) -> (i32, i32, i32) {
    %c0_i32 = arith.constant 0 : i32
    %c0_i32_0 = arith.constant 0 : i32
    return %arg1, %c0_i32, %arg0 : i32, i32, i32
  }
}

</mosaic_0001>

<bundles_post_ra>
// kernel: tpu_custom_call.1
= control target key start
LH: loop header
LB: loop body
LE: loop exit
PB: predicated region body
PF: predicated region fallthrough
CT: control target
= control target key end

     0   :  { %s5362_s0 = inlined_call_operand.hbm [shape: bf16[2048,256], index: 0, kind: input, shape index: {}]   ;;  %s5363_s1 = inlined_call_operand.hbm [shape: bf16[256,128], index: 1, kind: input, shape index: {}]   ;;  %s5364_s2 = inlined_call_operand.hbm [shape: bf16[2048,128], index: 2, kind: output, shape index: {0}]   ;;  %s5365_s3 = inlined_call_operand.hbm [shape: f32[2,8,128], index: 3, kind: output, shape index: {1}]   ;;  %s5366_s4 = inlined_call_operand.hbm [shape: f32[2,8,128], index: 4, kind: output, shape index: {2}]  }
   0x1   :  { %5411 = sst [smem:[#allocation36_spill]] %s5363_s1 }
   0x2   :  { %10 = vsyncpa [#allocation3], 0 }
   0x3   :  { %12 = vsyncpa [#allocation3 + $0x1], 0 }
   0x4   :  { %13 = vsyncpa [#allocation6], 0 }
   0x5   :  { %14 = vsyncpa [#allocation4], 0 }
   0x6   :  { %16 = vsyncpa [#allocation4 + $0x1], 0 }
   0x7   :  { %17 = vsyncpa [#allocation9], 0 }
   0x8   :  { %19 = vsyncpa [#allocation9 + $0x1], 0  ;;  %s4364_s15 = smov 0   ;;  %s4366_s16 = smov 0  }
   0x9   :  { %s4368_s17 = smov 0   ;;  %s4370_s18 = smov 0  }
   0xa   :  { %s4372_s19 = smov 0   ;;  %s4374_s20 = smov 0  }
   0xb LB: > { %s4395_s21 = sadd.s32 4294967295, %s4325_s20   ;;  %s5367_s22 = sadd.s32 4294967294, %s4325_s20   ;;  %s4325_s20 = sphi %s4374_s20, %s25_s20   ;;  %s4321_s19 = sphi %s4372_s19, %s5472_s19   ;;  %s4317_s18 = sphi %s4370_s18, %s5471_s18   ;;  %s4313_s17 = sphi %s4368_s17, %s5470_s17   ;;  %s4309_s16 = sphi %s4366_s16, %s5469_s16   ;;  %s4305_s15 = sphi %s4364_s15, %s5468_s15  }
   0xc   : > { %p66_p0 = scmp.ne.s32.totalorder %s4309_s16, %s4305_s15  ;;  %p5368_p1 = scmp.eq.s32.totalorder %s4395_s21, 0 }
   0xd   : > { %p126_p3 = scmp.eq.s32.totalorder %s5367_s22, 1  ;;  %p2993_p5 = scmp.ge.s32.totalorder %s4325_s20, 1 }
   0xe   : > { %p4406_p4 = por %p5368_p1, %p66_p0  ;;  %p189_p7 = scmp.lt.s32.totalorder %s4325_s20, 3 }
   0xf   : > { %p4411_p6 = por %p126_p3, %p66_p0  ;;  %s4327_s26 = smov [#allocation5]  }
  0x10   : > { %p4416_p8 = pnand %p2993_p5, %p189_p7  ;;  %s205_s27 = sshll.u32 %s4327_s26, 4  ;;  %s206_s27 = int_to_ptr.vmem [resolvable:$true] %s205_s27 }
  0x11   : > { %s5413_s24 = scalar_select %p4411_p6, 1, 0 }
  0x12   : > { %p3845_p9 = pneg %p4416_p8  ;;  %s40_s29 = sadd.s32 1, %s4321_s19 }
  0x13   : > { %s4142_s30 = scalar_lea.vmem %s206_s27, 2048  ;;  %p4150_p5 = scmp.lt.s32.totalorder %s206_s27, %s206_s27 }
  0x14   : > { %p4425_p11 = pnand %p3845_p9, %p5368_p1  ;;  %p4143_p13 = scmp.ne.s32.totalorder %s206_s27, %s4142_s30 }
  0x15   : > { %p4151_p7 = scmp.lt.s32.totalorder %s4142_s30, %s4142_s30 }
  0x16   : > { %p4133_p12 = pneg %p4425_p11 }
  0x17   : > { %p4152_p2 = por %p4151_p7, %p4150_p5 }
  0x18   : > { %p4145_p0 = pnand %p4143_p13, %p4133_p12 }
  0x1a   : > { %p4146_p3 = pneg %p4145_p0 }
  0x1c   : > { %p4153_p6 = pnand %p4152_p2, %p4146_p3 }
  0x1e   : > { %4156 = shalt.err (!%p4153_p6)
}
  0x1f   : > { %s4328_s5 = smov 64   ;;  %s4329_s6 = smov 4  }
  0x20   : > { %s5416_s1 = sld [smem:[#allocation36_spill]]  ;;  %p42_p2 = scmp.ge.s32.totalorder %s40_s29, 2 }
  0x21   : > { %s53_s9 = sadd.s32 1, %s4313_s17  ;;  %p60_p6 = scmp.ne.s32.totalorder %s4313_s17, %s4309_s16 }
  0x22   : > { %p61_p9 = scmp.eq.s32.totalorder %s4325_s20, 0  ;;  %s5474_s29 = smov (%p42_p2, %s40_s29), 0 }
  0x23   : > { %p5418_p13 = scmp.eq.s32.totalorder %s4395_s21, 1  ;;  %s48_s12 = ssub.s32 %s4321_s19, %s5474_s29 }
  0x24   : > { %p4443_p12 = por %p61_p9, %p60_p6  ;;  %p3864_p3 = scmp.lt.s32.totalorder %s4325_s20, 2 }
  0x25   : > { %p4449_p0 = por %p5418_p13, %p60_p6  ;;  %s219_s13 = sand.u32 1, %s4313_s17  }
  0x26   : > { %3848 = dma.hbm_to_vmem [thread:$0]  (!%p4425_p11), %s5416_s1, 2048, %s206_s27, [#allocation6], %s4328_s5, %s4328_s5, %s4329_s6  }
  0x27   : > { %p51_p11 = scmp.eq.s32.totalorder %s48_s12, 0  ;;  %s2996_s14 = sshll.u32 %s219_s13, 10 }
  0x28   : > { %s3288_s27 = sshll.u32 %s4321_s19, 14  ;;  %s223_s6 = scalar_lea.vmem [#allocation2], %s2996_s14 }
  0x29   : > { %s4458_s26 = scalar_select %p51_p11, %s4313_s17, %s53_s9  }
  0x2a   : > { %s232_s5 = scalar_lea.hbm %s5362_s0, %s3288_s27  ;;  %s233_s7 = sshll.u32 %s223_s6, 4  ;;  %s234_s7 = int_to_ptr.vmem [resolvable:$true] %s233_s7 }
  0x2b   : > { %p4466_p5 = pnand %p3864_p3, %p4443_p12  ;;  %s220_s22 = scalar_lea.sflag [#allocation3], %s219_s13 }
  0x2c   : > { %s4170_s12 = scalar_lea.vmem %s234_s7, 16384  ;;  %s4330_s9 = smov [#allocation2]  }
  0x2d   : > { %p4159_p7 = pneg %p4466_p5  ;;  %p4171_p2 = scmp.ne.s32.totalorder %s234_s7, %s4170_s12 }
  0x2e   : > { %s4175_s1 = sshll.u32 %s4330_s9, 4  ;;  %s4176_s1 = int_to_ptr.vmem [resolvable:$false] %s4175_s1 }
  0x2f   : > { %p4173_p6 = pnand %p4171_p2, %p4159_p7  ;;  %s4177_s27 = scalar_lea.vmem %s4176_s1, 32768 }
  0x30   : > { %p4178_p13 = scmp.lt.s32.totalorder %s234_s7, %s4176_s1  ;;  %p4179_p11 = scmp.lt.s32.totalorder %s4177_s27, %s4170_s12 }
  0x31   : > { %p4174_p9 = pneg %p4173_p6 }
  0x32   : > { %p4180_p10 = por %p4179_p11, %p4178_p13 }
  0x34   : > { %p4181_p1 = pnand %p4180_p10, %p4174_p9 }
  0x36   : > { %4184 = shalt.err (!%p4181_p1)
}
  0x37   : > { %s4331_s10 = smov 128   ;;  %s4332_s14 = smov 8  }
  0x38   : > { %3852 = dma.hbm_to_vmem [thread:$0]  (!%p4466_p5), %s232_s5, 16384, %s234_s7, %s220_s22, %s4331_s10, %s4331_s10, %s4332_s14  }
  0x39   : > { %245 = sbr.rel (%p4416_p8) target bundleno = 765 (0x2fd), region = 28 }
  0x3e   : > { %s4477_s13 = sand.u32 1, %s4309_s16  }
  0x3f   : > { %s3001_s28 = sshll.u32 %s4477_s13, 10  ;;  %s248_s1 = scalar_lea.sflag [#allocation3], %s4477_s13 }
  0x40   : > { %s4481_s30 = scalar_lea.vmem [#allocation2], %s3001_s28 }
  0x41   : > { %4288 = dma.done.wait (%p4406_p4), %s248_s1, 16384  }
  0x42   : > { %4290 = vsyncadd (%p4406_p4), %s248_s1, 4294950912  ;;  %p5421_p1 = scmp.eq.s32.totalorder %s4395_s21, 0 }
  0x44   : > { %4292 = dma.done.wait (%p5421_p1), [#allocation6], 2048   ;;  %p5422_p8 = pmov %p5421_p1 }
  0x45   : > { %v4333_v0 = vmov 0   ;;  %v3923_v1 = vld [vmem:[#allocation5 + $0x38] sm:$0xff]   ;;  %v3924_v2 = vld [vmem:[#allocation5 + $0x30] sm:$0xff]   ;;  %v3925_v3 = vld [vmem:[#allocation5 + $0x28] sm:$0xff]   ;;  %s3003_s22 = sshll.u32 %s4477_s13, 9  ;;  %s3417_s25 = sshll.u32 %s4317_s18, 13 }
  0x46   : > { %4294 = vsyncadd (%p5422_p8), [#allocation6], 4294965248  ;;  %1191 = vmatprep.subr.bf16.mxu0 %v4333_v0  ;;  %3801 = vmatprep.subr.bf16.mxu1 %v4333_v0  ;;  %v3926_v4 = vld [vmem:[#allocation5 + $0x20] sm:$0xff]   ;;  %v3927_v5 = vld [vmem:[#allocation5 + $0x18] sm:$0xff]   ;;  %s4635_s23 = scalar_lea.vmem [#allocation7], %s3003_s22  ;;  %s5079_s7 = scalar_lea.hbm %s5364_s2, %s3417_s25 }
  0x47   : > { %1192 = vmatpush1.bf16.msra.mxu0 %v3923_v1  ;;  %3817 = vmatpush1.bf16.msra.mxu1 %v3923_v1  ;;  %v3941_v6 = vld [vmem:[%s4481_s30 + $0x4] ss:$8 sps:$4 sm:$0xff]   ;;  %v3928_v7 = vld [vmem:[#allocation5 + $0x10] sm:$0xff]   ;;  %v3931_v10 = vld [vmem:[#allocation5 + $0x78] sm:$0xff]   ;;  %s2797_s8 = sshll.u32 %s4635_s23, 4  ;;  %s2773_s12 = scalar_lea.sflag [#allocation4], %s4477_s13  ;;  %s5085_s8 = int_to_ptr.vmem [resolvable:$true] %s2797_s8 }
  0x48   : > { %1193 = vmatprep.subr.bf16.mxu0 %v4333_v0  ;;  %3802 = vmatprep.subr.bf16.mxu1 %v4333_v0  ;;  %v3929_v8 = vld [vmem:[#allocation5 + $0x8] sm:$0xff]   ;;  %v3930_v9 = vld [vmem:[#allocation5] sm:$0xff]   ;;  %v3932_v11 = vld [vmem:[#allocation5 + $0x70] sm:$0xff]   ;;  %s4185_s9 = scalar_lea.vmem %s5085_s8, 8192  ;;  %s4334_s27 = smov [#allocation7]  }
  0x49   : > { %1223 = vmatprep.mubr.bf16.mxu0 %v3941_v6  ;;  %v3933_v12 = vld [vmem:[#allocation5 + $0x68] sm:$0xff]   ;;  %v3934_v13 = vld [vmem:[#allocation5 + $0x60] sm:$0xff]   ;;  %v3935_v14 = vld [vmem:[#allocation5 + $0x58] sm:$0xff]   ;;  %p4186_p4 = scmp.ne.s32.totalorder %s5085_s8, %s4185_s9  ;;  %s4189_s10 = sshll.u32 %s4334_s27, 4  ;;  %s4190_s10 = int_to_ptr.vmem [resolvable:$false] %s4189_s10 }
  0x4a   : > { %v3936_v15 = vld [vmem:[#allocation5 + $0x50] sm:$0xff]   ;;  %v3937_v16 = vld [vmem:[#allocation5 + $0x48] sm:$0xff]   ;;  %v3938_v18 = vld [vmem:[#allocation5 + $0x40] sm:$0xff]   ;;  %s4191_s14 = scalar_lea.vmem %s4190_s10, 16384  ;;  %p4192_p3 = scmp.lt.s32.totalorder %s5085_s8, %s4190_s10 }
  0x4b   : > { %1194 = vmatpush1.bf16.msra.mxu0 %v3924_v2  ;;  %3818 = vmatpush1.bf16.msra.mxu1 %v3924_v2  ;;  %v3989_v17 = vld [vmem:[%s4481_s30 + $0x204] ss:$8 sps:$4 sm:$0xff]   ;;  %v3939_v19 = vld [vmem:[%s4481_s30] ss:$8 sps:$4 sm:$0xff]   ;;  %v3942_v21 = vld [vmem:[%s4481_s30 + $0x14] ss:$8 sps:$4 sm:$0xff]   ;;  %p4187_p10 = pnand %p4186_p4, %p4449_p0  ;;  %p4193_p5 = scmp.lt.s32.totalorder %s4191_s14, %s4185_s9 }
  0x4c   : > { %1195 = vmatprep.subr.bf16.mxu0 %v4333_v0  ;;  %3803 = vmatprep.subr.bf16.mxu1 %v4333_v0  ;;  %v3987_v20 = vld [vmem:[%s4481_s30 + $0x200] ss:$8 sps:$4 sm:$0xff]   ;;  %v3993_v22 = vld [vmem:[%s4481_s30 + $0x214] ss:$8 sps:$4 sm:$0xff]   ;;  %v3944_v23 = vld [vmem:[%s4481_s30 + $0x10] ss:$8 sps:$4 sm:$0xff]  }
  0x4d   : > { %1479 = vmatprep.mubr.bf16.mxu1 %v3989_v17  ;;  %v3995_v24 = vld [vmem:[%s4481_s30 + $0x210] ss:$8 sps:$4 sm:$0xff]   ;;  %v3945_v25 = vld [vmem:[%s4481_s30 + $0x24] ss:$8 sps:$4 sm:$0xff]   ;;  %v3947_v27 = vld [vmem:[%s4481_s30 + $0x20] ss:$8 sps:$4 sm:$0xff]   ;;  %p4188_p12 = pneg %p4187_p10  ;;  %p4194_p7 = por %p4193_p5, %p4192_p3 }
  0x4e   : > { %v3999_v26 = vld [vmem:[%s4481_s30 + $0x224] ss:$8 sps:$4 sm:$0xff]   ;;  %v4001_v28 = vld [vmem:[%s4481_s30 + $0x220] ss:$8 sps:$4 sm:$0xff]   ;;  %v3948_v29 = vld [vmem:[%s4481_s30 + $0x34] ss:$8 sps:$4 sm:$0xff]  }
  0x4f   : > { %1196 = vmatpush1.bf16.msra.mxu0 %v3925_v3  ;;  %3819 = vmatpush1.bf16.msra.mxu1 %v3925_v3  ;;  %v4005_v30 = vld [vmem:[%s4481_s30 + $0x234] ss:$8 sps:$4 sm:$0xff]   ;;  %v3950_v31 = vld [vmem:[%s4481_s30 + $0x30] ss:$8 sps:$4 sm:$0xff]   ;;  %v3951_v33 = vld [vmem:[%s4481_s30 + $0x44] ss:$8 sps:$4 sm:$0xff]   ;;  %p4195_p2 = pnand %p4194_p7, %p4188_p12 }
  0x50   : > { %1197 = vmatprep.subr.bf16.mxu0 %v4333_v0  ;;  %3804 = vmatprep.subr.bf16.mxu1 %v4333_v0  ;;  %v4007_v32 = vld [vmem:[%s4481_s30 + $0x230] ss:$8 sps:$4 sm:$0xff]   ;;  %v4011_v34 = vld [vmem:[%s4481_s30 + $0x244] ss:$8 sps:$4 sm:$0xff]   ;;  %v3953_v35 = vld [vmem:[%s4481_s30 + $0x40] ss:$8 sps:$4 sm:$0xff]  }
  0x51   : > { %v4013_v36 = vld [vmem:[%s4481_s30 + $0x240] ss:$8 sps:$4 sm:$0xff]   ;;  %v3954_v37 = vld [vmem:[%s4481_s30 + $0x54] ss:$8 sps:$4 sm:$0xff]   ;;  %v3956_v39 = vld [vmem:[%s4481_s30 + $0x50] ss:$8 sps:$4 sm:$0xff]  }
  0x52   : > { %v4017_v38 = vld [vmem:[%s4481_s30 + $0x254] ss:$8 sps:$4 sm:$0xff]   ;;  %v4019_v40 = vld [vmem:[%s4481_s30 + $0x250] ss:$8 sps:$4 sm:$0xff]   ;;  %v3957_v41 = vld [vmem:[%s4481_s30 + $0x64] ss:$8 sps:$4 sm:$0xff]  }
  0x53   : > { %1198 = vmatpush1.bf16.msra.mxu0 %v3926_v4  ;;  %3820 = vmatpush1.bf16.msra.mxu1 %v3926_v4  ;;  %v4023_v42 = vld [vmem:[%s4481_s30 + $0x264] ss:$8 sps:$4 sm:$0xff]   ;;  %v3959_v43 = vld [vmem:[%s4481_s30 + $0x60] ss:$8 sps:$4 sm:$0xff]   ;;  %v3960_v45 = vld [vmem:[%s4481_s30 + $0x74] ss:$8 sps:$4 sm:$0xff]  }
  0x54   : > { %1199 = vmatprep.subr.bf16.mxu0 %v4333_v0  ;;  %3805 = vmatprep.subr.bf16.mxu1 %v4333_v0  ;;  %v4025_v44 = vld [vmem:[%s4481_s30 + $0x260] ss:$8 sps:$4 sm:$0xff]   ;;  %v4029_v46 = vld [vmem:[%s4481_s30 + $0x274] ss:$8 sps:$4 sm:$0xff]   ;;  %v3962_v47 = vld [vmem:[%s4481_s30 + $0x70] ss:$8 sps:$4 sm:$0xff]  }
  0x55   : > { %v4031_v48 = vld [vmem:[%s4481_s30 + $0x270] ss:$8 sps:$4 sm:$0xff]   ;;  %v3963_v49 = vld [vmem:[%s4481_s30 + $0x84] ss:$8 sps:$4 sm:$0xff]   ;;  %v3965_v51 = vld [vmem:[%s4481_s30 + $0x80] ss:$8 sps:$4 sm:$0xff]  }
  0x56   : > { %v4035_v50 = vld [vmem:[%s4481_s30 + $0x284] ss:$8 sps:$4 sm:$0xff]   ;;  %v4037_v52 = vld [vmem:[%s4481_s30 + $0x280] ss:$8 sps:$4 sm:$0xff]   ;;  %v3966_v53 = vld [vmem:[%s4481_s30 + $0x94] ss:$8 sps:$4 sm:$0xff]  }
  0x57   : > { %1200 = vmatpush1.bf16.msra.mxu0 %v3927_v5  ;;  %3821 = vmatpush1.bf16.msra.mxu1 %v3927_v5  ;;  %v4041_v54 = vld [vmem:[%s4481_s30 + $0x294] ss:$8 sps:$4 sm:$0xff]   ;;  %v3968_v55 = vld [vmem:[%s4481_s30 + $0x90] ss:$8 sps:$4 sm:$0xff]   ;;  %v3969_v57 = vld [vmem:[%s4481_s30 + $0xa4] ss:$8 sps:$4 sm:$0xff]  }
  0x58   : > { %1201 = vmatprep.subr.bf16.mxu0 %v4333_v0  ;;  %3806 = vmatprep.subr.bf16.mxu1 %v4333_v0  ;;  %v4043_v56 = vld [vmem:[%s4481_s30 + $0x290] ss:$8 sps:$4 sm:$0xff]   ;;  %v4047_v58 = vld [vmem:[%s4481_s30 + $0x2a4] ss:$8 sps:$4 sm:$0xff]   ;;  %v3971_v59 = vld [vmem:[%s4481_s30 + $0xa0] ss:$8 sps:$4 sm:$0xff]  }
  0x59   : > { %v4049_v60 = vld [vmem:[%s4481_s30 + $0x2a0] ss:$8 sps:$4 sm:$0xff]   ;;  %v3972_v61 = vld [vmem:[%s4481_s30 + $0xb4] ss:$8 sps:$4 sm:$0xff]   ;;  %v3974_v63 = vld [vmem:[%s4481_s30 + $0xb0] ss:$8 sps:$4 sm:$0xff]  }
  0x5a   : > { %v4053_v62 = vld [vmem:[%s4481_s30 + $0x2b4] ss:$8 sps:$4 sm:$0xff]   ;;  %v3975_v1 = vld [vmem:[%s4481_s30 + $0xc4] ss:$8 sps:$4 sm:$0xff]   ;;  %v3977_v3 = vld [vmem:[%s4481_s30 + $0xc0] ss:$8 sps:$4 sm:$0xff]  }
  0x5b   : > { %1202 = vmatpush1.bf16.msra.mxu0 %v3928_v7  ;;  %3822 = vmatpush1.bf16.msra.mxu1 %v3928_v7  ;;  %v4059_v2 = vld [vmem:[%s4481_s30 + $0x2c4] ss:$8 sps:$4 sm:$0xff]   ;;  %v4061_v4 = vld [vmem:[%s4481_s30 + $0x2c0] ss:$8 sps:$4 sm:$0xff]   ;;  %v3978_v5 = vld [vmem:[%s4481_s30 + $0xd4] ss:$8 sps:$4 sm:$0xff]  }
  0x5c   : > { %1203 = vmatprep.subr.bf16.mxu0 %v4333_v0  ;;  %3807 = vmatprep.subr.bf16.mxu1 %v4333_v0  ;;  %v4065_v6 = vld [vmem:[%s4481_s30 + $0x2d4] ss:$8 sps:$4 sm:$0xff]   ;;  %v3980_v7 = vld [vmem:[%s4481_s30 + $0xd0] ss:$8 sps:$4 sm:$0xff]   ;;  %v3990_v17 = vld [vmem:[%s4481_s30 + $0x104] ss:$8 sps:$4 sm:$0xff]  }
  0x5f   : > { %1204 = vmatpush1.bf16.msra.mxu0 %v3929_v8  ;;  %3823 = vmatpush1.bf16.msra.mxu1 %v3929_v8  ;;  %v4067_v8 = vld [vmem:[%s4481_s30 + $0x2d0] ss:$8 sps:$4 sm:$0xff]  }
  0x60   : > { %1205 = vmatprep.subr.bf16.mxu0 %v4333_v0  ;;  %3808 = vmatprep.subr.bf16.mxu1 %v4333_v0 }
  0x63   : > { %1206 = vmatpush1.bf16.msra.mxu0 %v3930_v9  ;;  %3824 = vmatpush1.bf16.msra.mxu1 %v3930_v9  ;;  %v3981_v9 = vld [vmem:[%s4481_s30 + $0xe4] ss:$8 sps:$4 sm:$0xff]  }
  0x64   : > { %1207 = vmatprep.subr.bf16.mxu0 %v4333_v0  ;;  %3809 = vmatprep.subr.bf16.mxu1 %v4333_v0 }
  0x67   : > { %1208 = vmatpush2.bf16.msra.mxu0 %v3931_v10  ;;  %3825 = vmatpush2.bf16.msra.mxu1 %v3931_v10  ;;  %v4071_v10 = vld [vmem:[%s4481_s30 + $0x2e4] ss:$8 sps:$4 sm:$0xff]  }
  0x68   : > { %1209 = vmatprep.subr.bf16.mxu0 %v4333_v0  ;;  %3810 = vmatprep.subr.bf16.mxu1 %v4333_v0 }
  0x6b   : > { %1210 = vmatpush2.bf16.msra.mxu0 %v3932_v11  ;;  %3826 = vmatpush2.bf16.msra.mxu1 %v3932_v11  ;;  %v3983_v11 = vld [vmem:[%s4481_s30 + $0xe0] ss:$8 sps:$4 sm:$0xff]  }
  0x6c   : > { %1211 = vmatprep.subr.bf16.mxu0 %v4333_v0  ;;  %3811 = vmatprep.subr.bf16.mxu1 %v4333_v0 }
  0x6f   : > { %1212 = vmatpush2.bf16.msra.mxu0 %v3933_v12  ;;  %3827 = vmatpush2.bf16.msra.mxu1 %v3933_v12  ;;  %v4073_v12 = vld [vmem:[%s4481_s30 + $0x2e0] ss:$8 sps:$4 sm:$0xff]  }
  0x70   : > { %1213 = vmatprep.subr.bf16.mxu0 %v4333_v0  ;;  %3812 = vmatprep.subr.bf16.mxu1 %v4333_v0 }
  0x73   : > { %1214 = vmatpush2.bf16.msra.mxu0 %v3934_v13  ;;  %3828 = vmatpush2.bf16.msra.mxu1 %v3934_v13  ;;  %v3984_v13 = vld [vmem:[%s4481_s30 + $0xf4] ss:$8 sps:$4 sm:$0xff]  }
  0x74   : > { %1215 = vmatprep.subr.bf16.mxu0 %v4333_v0  ;;  %3813 = vmatprep.subr.bf16.mxu1 %v4333_v0 }
  0x77   : > { %1216 = vmatpush2.bf16.msra.mxu0 %v3935_v14  ;;  %3829 = vmatpush2.bf16.msra.mxu1 %v3935_v14  ;;  %v4077_v14 = vld [vmem:[%s4481_s30 + $0x2f4] ss:$8 sps:$4 sm:$0xff]  }
  0x78   : > { %1217 = vmatprep.subr.bf16.mxu0 %v4333_v0  ;;  %3814 = vmatprep.subr.bf16.mxu1 %v4333_v0 }
  0x7b   : > { %1218 = vmatpush2.bf16.msra.mxu0 %v3936_v15  ;;  %3830 = vmatpush2.bf16.msra.mxu1 %v3936_v15  ;;  %v3986_v15 = vld [vmem:[%s4481_s30 + $0xf0] ss:$8 sps:$4 sm:$0xff]  }
  0x7c   : > { %1219 = vmatprep.subr.bf16.mxu0 %v4333_v0  ;;  %3815 = vmatprep.subr.bf16.mxu1 %v4333_v0 }
  0x7f   : > { %1220 = vmatpush2.bf16.msra.mxu0 %v3937_v16  ;;  %3831 = vmatpush2.bf16.msra.mxu1 %v3937_v16  ;;  %v4079_v16 = vld [vmem:[%s4481_s30 + $0x2f0] ss:$8 sps:$4 sm:$0xff]  }
  0x80   : > { %1221 = vmatprep.subr.bf16.mxu0 %v4333_v0  ;;  %3816 = vmatprep.subr.bf16.mxu1 %v4333_v0  ;;  %v4055_v0 = vld [vmem:[%s4481_s30 + $0x2b0] ss:$8 sps:$4 sm:$0xff]  }
  0x83   : > { %1222 = vmatpush2.bf16.msra.mxu0 %v3938_v18  ;;  %3832 = vmatpush2.bf16.msra.mxu1 %v3938_v18  ;;  %v4083_v18 = vld [vmem:[%s4481_s30 + $0x304] ss:$8 sps:$4 sm:$0xff]  }
  0x86   : > { %1224 = vmatmul.mubr.bf16.vlgmr.msra.gmra.mxu0 %v3939_v19  ;;  %1480 = vmatmul.mubr.bf16.vlgmr.msra.gmra.mxu1 %v3987_v20  ;;  %v3992_v19 = vld [vmem:[%s4481_s30 + $0x100] ss:$8 sps:$4 sm:$0xff]  }
  0x87   : > { %1231 = vmatprep.mubr.bf16.mxu0 %v3942_v21  ;;  %1487 = vmatprep.mubr.bf16.mxu1 %v3993_v22  ;;  %v4085_v20 = vld [vmem:[%s4481_s30 + $0x300] ss:$8 sps:$4 sm:$0xff]   ;;  %v3996_v21 = vld [vmem:[%s4481_s30 + $0x114] ss:$8 sps:$4 sm:$0xff]  }
  0x88   : > { %v4086_v22 = vld [vmem:[%s4481_s30 + $0x314] ss:$8 sps:$4 sm:$0xff]  }
  0x8e   : > { %1232 = vmatmul.mubr.bf16.gmra.mxu0 %v3944_v23  ;;  %1488 = vmatmul.mubr.bf16.gmra.mxu1 %v3995_v24  ;;  %v3998_v23 = vld [vmem:[%s4481_s30 + $0x110] ss:$8 sps:$4 sm:$0xff]  }
  0x8f   : > { %1239 = vmatprep.mubr.bf16.mxu0 %v3945_v25  ;;  %1495 = vmatprep.mubr.bf16.mxu1 %v3999_v26  ;;  %v4088_v24 = vld [vmem:[%s4481_s30 + $0x310] ss:$8 sps:$4 sm:$0xff]   ;;  %v4002_v25 = vld [vmem:[%s4481_s30 + $0x124] ss:$8 sps:$4 sm:$0xff]  }
  0x90   : > { %v4089_v26 = vld [vmem:[%s4481_s30 + $0x324] ss:$8 sps:$4 sm:$0xff]  }
  0x96   : > { %1240 = vmatmul.mubr.bf16.gmra.mxu0 %v3947_v27  ;;  %1496 = vmatmul.mubr.bf16.gmra.mxu1 %v4001_v28  ;;  %v4004_v27 = vld [vmem:[%s4481_s30 + $0x120] ss:$8 sps:$4 sm:$0xff]  }
  0x97   : > { %1247 = vmatprep.mubr.bf16.mxu0 %v3948_v29  ;;  %1503 = vmatprep.mubr.bf16.mxu1 %v4005_v30  ;;  %v4091_v28 = vld [vmem:[%s4481_s30 + $0x320] ss:$8 sps:$4 sm:$0xff]   ;;  %v4008_v29 = vld [vmem:[%s4481_s30 + $0x134] ss:$8 sps:$4 sm:$0xff]  }
  0x98   : > { %v4092_v30 = vld [vmem:[%s4481_s30 + $0x334] ss:$8 sps:$4 sm:$0xff]  }
  0x9e   : > { %1248 = vmatmul.mubr.bf16.gmra.mxu0 %v3950_v31  ;;  %1504 = vmatmul.mubr.bf16.gmra.mxu1 %v4007_v32  ;;  %v4010_v31 = vld [vmem:[%s4481_s30 + $0x130] ss:$8 sps:$4 sm:$0xff]  }
  0x9f   : > { %1255 = vmatprep.mubr.bf16.mxu0 %v3951_v33  ;;  %1511 = vmatprep.mubr.bf16.mxu1 %v4011_v34  ;;  %v4094_v32 = vld [vmem:[%s4481_s30 + $0x330] ss:$8 sps:$4 sm:$0xff]   ;;  %v4014_v33 = vld [vmem:[%s4481_s30 + $0x144] ss:$8 sps:$4 sm:$0xff]  }
  0xa0   : > { %v4095_v34 = vld [vmem:[%s4481_s30 + $0x344] ss:$8 sps:$4 sm:$0xff]  }
  0xa6   : > { %1256 = vmatmul.mubr.bf16.gmra.mxu0 %v3953_v35  ;;  %1512 = vmatmul.mubr.bf16.gmra.mxu1 %v4013_v36  ;;  %v4016_v35 = vld [vmem:[%s4481_s30 + $0x140] ss:$8 sps:$4 sm:$0xff]  }
  0xa7   : > { %1263 = vmatprep.mubr.bf16.mxu0 %v3954_v37  ;;  %1519 = vmatprep.mubr.bf16.mxu1 %v4017_v38  ;;  %v4097_v36 = vld [vmem:[%s4481_s30 + $0x340] ss:$8 sps:$4 sm:$0xff]   ;;  %v4020_v37 = vld [vmem:[%s4481_s30 + $0x154] ss:$8 sps:$4 sm:$0xff]  }
  0xa8   : > { %v4098_v38 = vld [vmem:[%s4481_s30 + $0x354] ss:$8 sps:$4 sm:$0xff]  }
  0xae   : > { %1264 = vmatmul.mubr.bf16.gmra.mxu0 %v3956_v39  ;;  %1520 = vmatmul.mubr.bf16.gmra.mxu1 %v4019_v40  ;;  %v4022_v39 = vld [vmem:[%s4481_s30 + $0x150] ss:$8 sps:$4 sm:$0xff]  }
  0xaf   : > { %1271 = vmatprep.mubr.bf16.mxu0 %v3957_v41  ;;  %1527 = vmatprep.mubr.bf16.mxu1 %v4023_v42  ;;  %v4100_v40 = vld [vmem:[%s4481_s30 + $0x350] ss:$8 sps:$4 sm:$0xff]   ;;  %v4026_v41 = vld [vmem:[%s4481_s30 + $0x164] ss:$8 sps:$4 sm:$0xff]  }
  0xb0   : > { %v4101_v42 = vld [vmem:[%s4481_s30 + $0x364] ss:$8 sps:$4 sm:$0xff]  }
  0xb6   : > { %1272 = vmatmul.mubr.bf16.gmra.mxu0 %v3959_v43  ;;  %1528 = vmatmul.mubr.bf16.gmra.mxu1 %v4025_v44  ;;  %v4028_v43 = vld [vmem:[%s4481_s30 + $0x160] ss:$8 sps:$4 sm:$0xff]  }
  0xb7   : > { %1279 = vmatprep.mubr.bf16.mxu0 %v3960_v45  ;;  %1535 = vmatprep.mubr.bf16.mxu1 %v4029_v46  ;;  %v4103_v44 = vld [vmem:[%s4481_s30 + $0x360] ss:$8 sps:$4 sm:$0xff]   ;;  %v4032_v45 = vld [vmem:[%s4481_s30 + $0x174] ss:$8 sps:$4 sm:$0xff]  }
  0xb8   : > { %v4104_v46 = vld [vmem:[%s4481_s30 + $0x374] ss:$8 sps:$4 sm:$0xff]  }
  0xbe   : > { %1280 = vmatmul.mubr.bf16.gmra.mxu0 %v3962_v47  ;;  %1536 = vmatmul.mubr.bf16.gmra.mxu1 %v4031_v48  ;;  %v4034_v47 = vld [vmem:[%s4481_s30 + $0x170] ss:$8 sps:$4 sm:$0xff]  }
  0xbf   : > { %1287 = vmatprep.mubr.bf16.mxu0 %v3963_v49  ;;  %1543 = vmatprep.mubr.bf16.mxu1 %v4035_v50  ;;  %v4106_v48 = vld [vmem:[%s4481_s30 + $0x370] ss:$8 sps:$4 sm:$0xff]   ;;  %v4038_v49 = vld [vmem:[%s4481_s30 + $0x184] ss:$8 sps:$4 sm:$0xff]  }
  0xc0   : > { %v4107_v50 = vld [vmem:[%s4481_s30 + $0x384] ss:$8 sps:$4 sm:$0xff]  }
  0xc6   : > { %1288 = vmatmul.mubr.bf16.gmra.mxu0 %v3965_v51  ;;  %1544 = vmatmul.mubr.bf16.gmra.mxu1 %v4037_v52  ;;  %v4040_v51 = vld [vmem:[%s4481_s30 + $0x180] ss:$8 sps:$4 sm:$0xff]  }
  0xc7   : > { %1295 = vmatprep.mubr.bf16.mxu0 %v3966_v53  ;;  %1551 = vmatprep.mubr.bf16.mxu1 %v4041_v54  ;;  %v4109_v52 = vld [vmem:[%s4481_s30 + $0x380] ss:$8 sps:$4 sm:$0xff]   ;;  %v4044_v53 = vld [vmem:[%s4481_s30 + $0x194] ss:$8 sps:$4 sm:$0xff]  }
  0xc8   : > { %v4110_v54 = vld [vmem:[%s4481_s30 + $0x394] ss:$8 sps:$4 sm:$0xff]  }
  0xce   : > { %1296 = vmatmul.mubr.bf16.gmra.mxu0 %v3968_v55  ;;  %1552 = vmatmul.mubr.bf16.gmra.mxu1 %v4043_v56 }
  0xcf   : > { %1303 = vmatprep.mubr.bf16.mxu0 %v3969_v57  ;;  %1559 = vmatprep.mubr.bf16.mxu1 %v4047_v58 }
  0xd6   : > { %1304 = vmatmul.mubr.bf16.gmra.mxu0 %v3971_v59  ;;  %1560 = vmatmul.mubr.bf16.gmra.mxu1 %v4049_v60 }
  0xd7   : > { %1311 = vmatprep.mubr.bf16.mxu0 %v3972_v61  ;;  %1567 = vmatprep.mubr.bf16.mxu1 %v4053_v62  ;;  %v4046_v61 = vld [vmem:[%s4481_s30 + $0x190] ss:$8 sps:$4 sm:$0xff]  }
  0xde   : > { %1312 = vmatmul.mubr.bf16.gmra.mxu0 %v3974_v63  ;;  %1568 = vmatmul.mubr.bf16.gmra.mxu1 %v4055_v0  ;;  %v4112_v63 = vld [vmem:[%s4481_s30 + $0x390] ss:$8 sps:$4 sm:$0xff]  }
  0xdf   : > { %1319 = vmatprep.mubr.bf16.mxu0 %v3975_v1  ;;  %1575 = vmatprep.mubr.bf16.mxu1 %v4059_v2 }
  0xe6   : > { %1320 = vmatmul.mubr.bf16.gmra.mxu0 %v3977_v3  ;;  %1576 = vmatmul.mubr.bf16.gmra.mxu1 %v4061_v4  ;;  %v4050_v3 = vld [vmem:[%s4481_s30 + $0x1a4] ss:$8 sps:$4 sm:$0xff]  }
  0xe7   : > { %1327 = vmatprep.mubr.bf16.mxu0 %v3978_v5  ;;  %1583 = vmatprep.mubr.bf16.mxu1 %v4065_v6 }
  0xee   : > { %1328 = vmatmul.mubr.bf16.gmra.mxu0 %v3980_v7  ;;  %1584 = vmatmul.mubr.bf16.gmra.mxu1 %v4067_v8  ;;  %v4113_v8 = vld [vmem:[%s4481_s30 + $0x3a4] ss:$8 sps:$4 sm:$0xff]  }
  0xef   : > { %1335 = vmatprep.mubr.bf16.mxu0 %v3981_v9  ;;  %1591 = vmatprep.mubr.bf16.mxu1 %v4071_v10 }
  0xf6   : > { %1336 = vmatmul.mubr.bf16.gmra.mxu0 %v3983_v11  ;;  %1592 = vmatmul.mubr.bf16.gmra.mxu1 %v4073_v12 }
  0xf7   : > { %1343 = vmatprep.mubr.bf16.mxu0 %v3984_v13  ;;  %1599 = vmatprep.mubr.bf16.mxu1 %v4077_v14 }
  0xfe   : > { %1344 = vmatmul.mubr.bf16.gmra.mxu0 %v3986_v15  ;;  %1600 = vmatmul.mubr.bf16.gmra.mxu1 %v4079_v16 }
  0xff   : > { %1351 = vmatprep.mubr.bf16.mxu0 %v3990_v17  ;;  %1607 = vmatprep.mubr.bf16.mxu1 %v4083_v18  ;;  %v4052_v17 = vld [vmem:[%s4481_s30 + $0x1a0] ss:$8 sps:$4 sm:$0xff]  }
 0x106   : > { %1352 = vmatmul.mubr.bf16.gmra.mxu0 %v3992_v19  ;;  %1608 = vmatmul.mubr.bf16.gmra.mxu1 %v4085_v20  ;;  %v4115_v19 = vld [vmem:[%s4481_s30 + $0x3a0] ss:$8 sps:$4 sm:$0xff]  }
 0x107   : > { %1359 = vmatprep.mubr.bf16.mxu0 %v3996_v21  ;;  %1615 = vmatprep.mubr.bf16.mxu1 %v4086_v22 }
 0x10e   : > { %1360 = vmatmul.mubr.bf16.gmra.mxu0 %v3998_v23  ;;  %1616 = vmatmul.mubr.bf16.gmra.mxu1 %v4088_v24  ;;  %v4056_v23 = vld [vmem:[%s4481_s30 + $0x1b4] ss:$8 sps:$4 sm:$0xff]  }
 0x10f   : > { %1367 = vmatprep.mubr.bf16.mxu0 %v4002_v25  ;;  %1623 = vmatprep.mubr.bf16.mxu1 %v4089_v26 }
 0x116   : > { %1368 = vmatmul.mubr.bf16.gmra.mxu0 %v4004_v27  ;;  %1624 = vmatmul.mubr.bf16.gmra.mxu1 %v4091_v28  ;;  %v4116_v28 = vld [vmem:[%s4481_s30 + $0x3b4] ss:$8 sps:$4 sm:$0xff]  }
 0x117   : > { %1375 = vmatprep.mubr.bf16.mxu0 %v4008_v29  ;;  %1631 = vmatprep.mubr.bf16.mxu1 %v4092_v30 }
 0x11e   : > { %1376 = vmatmul.mubr.bf16.gmra.mxu0 %v4010_v31  ;;  %1632 = vmatmul.mubr.bf16.gmra.mxu1 %v4094_v32 }
 0x11f   : > { %1383 = vmatprep.mubr.bf16.mxu0 %v4014_v33  ;;  %1639 = vmatprep.mubr.bf16.mxu1 %v4095_v34 }
 0x126   : > { %1384 = vmatmul.mubr.bf16.gmra.mxu0 %v4016_v35  ;;  %1640 = vmatmul.mubr.bf16.gmra.mxu1 %v4097_v36 }
 0x127   : > { %1391 = vmatprep.mubr.bf16.mxu0 %v4020_v37  ;;  %1647 = vmatprep.mubr.bf16.mxu1 %v4098_v38  ;;  %v4058_v37 = vld [vmem:[%s4481_s30 + $0x1b0] ss:$8 sps:$4 sm:$0xff]  }
 0x12e   : > { %1392 = vmatmul.mubr.bf16.gmra.mxu0 %v4022_v39  ;;  %1648 = vmatmul.mubr.bf16.gmra.mxu1 %v4100_v40  ;;  %v4118_v39 = vld [vmem:[%s4481_s30 + $0x3b0] ss:$8 sps:$4 sm:$0xff]  }
 0x12f   : > { %1399 = vmatprep.mubr.bf16.mxu0 %v4026_v41  ;;  %1655 = vmatprep.mubr.bf16.mxu1 %v4101_v42 }
 0x136   : > { %1400 = vmatmul.mubr.bf16.gmra.mxu0 %v4028_v43  ;;  %1656 = vmatmul.mubr.bf16.gmra.mxu1 %v4103_v44  ;;  %v4064_v43 = vld [vmem:[%s4481_s30 + $0x1c4] ss:$8 sps:$4 sm:$0xff]  }
 0x137   : > { %1407 = vmatprep.mubr.bf16.mxu0 %v4032_v45  ;;  %1663 = vmatprep.mubr.bf16.mxu1 %v4104_v46 }
 0x13e   : > { %1408 = vmatmul.mubr.bf16.gmra.mxu0 %v4034_v47  ;;  %1664 = vmatmul.mubr.bf16.gmra.mxu1 %v4106_v48  ;;  %v4121_v48 = vld [vmem:[%s4481_s30 + $0x3c4] ss:$8 sps:$4 sm:$0xff]  }
 0x13f   : > { %1415 = vmatprep.mubr.bf16.mxu0 %v4038_v49  ;;  %1671 = vmatprep.mubr.bf16.mxu1 %v4107_v50 }
 0x146   : > { %v1225_v55 = vpop.f32.mrf.mxu0  ;;  %1416 = vmatmul.mubr.bf16.gmra.mxu0 %v4040_v51  ;;  %v4625_v56 = vpop.f32.mrf.mxu1  ;;  %1672 = vmatmul.mubr.bf16.gmra.mxu1 %v4109_v52 }
 0x147   : > { %1423 = vmatprep.mubr.bf16.mxu0 %v4044_v53  ;;  %1679 = vmatprep.mubr.bf16.mxu1 %v4110_v54  ;;  %v2509_v59 = vmul.f32 %v1225_v55, %v1225_v55 }
 0x148   : > { %v1227_v57 = vpop.f32.mrf.mxu0  ;;  %v1483_v58 = vpop.f32.mrf.mxu1 }
 0x149   : > { %v4062_v58 = vld [vmem:[%s4481_s30 + $0x1c0] ss:$8 sps:$4 sm:$0xff]  }
 0x14a   : > { %v1228_v60 = vpop.f32.mrf.mxu0  ;;  %v4629_v62 = vpop.f32.mrf.mxu1 }
 0x14b   : > { %v3421_v0 = vpack.c.bf16 %v1228_v60, %v1225_v55  ;;  %v2376_v1 = vadd.f32 %v1228_v60, %v1225_v55  ;;  %v2510_v2 = vmul.f32 %v1228_v60, %v1228_v60  ;;  %v3581_v4 = vpack.c.bf16 %v4629_v62, %v4625_v56  ;;  %v4119_v60 = vld [vmem:[%s4481_s30 + $0x3c0] ss:$8 sps:$4 sm:$0xff]  }
 0x14c   : > { %v1230_v5 = vpop.f32.mrf.mxu0  ;;  %v1486_v6 = vpop.f32.mrf.mxu1 }
 0x14d   : > { %3422 = vst [vmem:[%s4635_s23] sm:$0xff] %v3421_v0   ;;  %v2637_v7 = vadd.f32 %v2510_v2, %v2509_v59  ;;  %3769 = vst [vmem:[%s4635_s23 + $0x100] sm:$0xff] %v3581_v4   ;;  %v4124_v6 = vld [vmem:[%s4481_s30 + $0x3d4] ss:$8 sps:$4 sm:$0xff]  }
 0x14e   : > { %v1233_v9 = vpop.f32.mrf.mxu0  ;;  %1424 = vmatmul.mubr.bf16.gmra.mxu0 %v4046_v61  ;;  %v4640_v10 = vpop.f32.mrf.mxu1  ;;  %1680 = vmatmul.mubr.bf16.gmra.mxu1 %v4112_v63 }
 0x14f   : > { %v2377_v11 = vadd.f32 %v2376_v1, %v1233_v9  ;;  %v2511_v12 = vmul.f32 %v1233_v9, %v1233_v9  ;;  %1431 = vmatprep.mubr.bf16.mxu0 %v4050_v3  ;;  %1687 = vmatprep.mubr.bf16.mxu1 %v4113_v8  ;;  %v4070_v1 = vld [vmem:[%s4481_s30 + $0x1d4] ss:$8 sps:$4 sm:$0xff]  }
 0x150   : > { %v1235_v13 = vpop.f32.mrf.mxu0  ;;  %v1491_v14 = vpop.f32.mrf.mxu1 }
 0x151   : > { %v2638_v15 = vadd.f32 %v2637_v7, %v2511_v12 }
 0x152   : > { %v1236_v16 = vpop.f32.mrf.mxu0  ;;  %v4643_v18 = vpop.f32.mrf.mxu1 }
 0x153   : > { %v3426_v20 = vpack.c.bf16 %v1236_v16, %v1233_v9  ;;  %v2378_v21 = vadd.f32 %v2377_v11, %v1236_v16  ;;  %v2512_v22 = vmul.f32 %v1236_v16, %v1236_v16  ;;  %v3586_v24 = vpack.c.bf16 %v4643_v18, %v4640_v10  ;;  %v4068_v16 = vld [vmem:[%s4481_s30 + $0x1d0] ss:$8 sps:$4 sm:$0xff]  }
 0x154   : > { %v1238_v25 = vpop.f32.mrf.mxu0  ;;  %v1494_v26 = vpop.f32.mrf.mxu1 }
 0x155   : > { %3738 = vst [vmem:[%s4635_s23 + $0x8] sm:$0xff] %v3426_v20   ;;  %v2639_v27 = vadd.f32 %v2638_v15, %v2512_v22  ;;  %3770 = vst [vmem:[%s4635_s23 + $0x108] sm:$0xff] %v3586_v24  }
 0x156   : > { %v1241_v29 = vpop.f32.mrf.mxu0  ;;  %1432 = vmatmul.mubr.bf16.gmra.mxu0 %v4052_v17  ;;  %v4652_v30 = vpop.f32.mrf.mxu1  ;;  %1688 = vmatmul.mubr.bf16.gmra.mxu1 %v4115_v19  ;;  %v4122_v19 = vld [vmem:[%s4481_s30 + $0x3d0] ss:$8 sps:$4 sm:$0xff]  }
 0x157   : > { %v2379_v31 = vadd.f32 %v2378_v21, %v1241_v29  ;;  %v2513_v32 = vmul.f32 %v1241_v29, %v1241_v29  ;;  %1439 = vmatprep.mubr.bf16.mxu0 %v4056_v23  ;;  %1695 = vmatprep.mubr.bf16.mxu1 %v4116_v28  ;;  %v4076_v23 = vld [vmem:[%s4481_s30 + $0x1e4] ss:$8 sps:$4 sm:$0xff]  }
 0x158   : > { %v1243_v33 = vpop.f32.mrf.mxu0  ;;  %v1499_v34 = vpop.f32.mrf.mxu1  ;;  %v4127_v28 = vld [vmem:[%s4481_s30 + $0x3e4] ss:$8 sps:$4 sm:$0xff]  }
 0x159   : > { %v2640_v35 = vadd.f32 %v2639_v27, %v2513_v32 }
 0x15a   : > { %v1244_v36 = vpop.f32.mrf.mxu0  ;;  %v4655_v38 = vpop.f32.mrf.mxu1 }
 0x15b   : > { %v3431_v40 = vpack.c.bf16 %v1244_v36, %v1241_v29  ;;  %v2380_v41 = vadd.f32 %v2379_v31, %v1244_v36  ;;  %v2514_v42 = vmul.f32 %v1244_v36, %v1244_v36  ;;  %v3591_v44 = vpack.c.bf16 %v4655_v38, %v4652_v30 }
 0x15c   : > { %v1246_v45 = vpop.f32.mrf.mxu0  ;;  %v1502_v46 = vpop.f32.mrf.mxu1 }
 0x15d   : > { %3739 = vst [vmem:[%s4635_s23 + $0x10] sm:$0xff] %v3431_v40   ;;  %v2641_v47 = vadd.f32 %v2640_v35, %v2514_v42  ;;  %3771 = vst [vmem:[%s4635_s23 + $0x110] sm:$0xff] %v3591_v44   ;;  %v4082_v45 = vld [vmem:[%s4481_s30 + $0x1f4] ss:$8 sps:$4 sm:$0xff]  }
 0x15e   : > { %v1249_v49 = vpop.f32.mrf.mxu0  ;;  %1440 = vmatmul.mubr.bf16.gmra.mxu0 %v4058_v37  ;;  %v4664_v50 = vpop.f32.mrf.mxu1  ;;  %1696 = vmatmul.mubr.bf16.gmra.mxu1 %v4118_v39  ;;  %v4074_v39 = vld [vmem:[%s4481_s30 + $0x1e0] ss:$8 sps:$4 sm:$0xff]  }
 0x15f   : > { %v2381_v51 = vadd.f32 %v2380_v41, %v1249_v49  ;;  %v2515_v52 = vmul.f32 %v1249_v49, %v1249_v49  ;;  %1447 = vmatprep.mubr.bf16.mxu0 %v4064_v43  ;;  %1703 = vmatprep.mubr.bf16.mxu1 %v4121_v48  ;;  %v4125_v41 = vld [vmem:[%s4481_s30 + $0x3e0] ss:$8 sps:$4 sm:$0xff]  }
 0x160   : > { %v1251_v53 = vpop.f32.mrf.mxu0  ;;  %v1507_v54 = vpop.f32.mrf.mxu1 }
 0x161   : > { %v2642_v55 = vadd.f32 %v2641_v47, %v2515_v52 }
 0x162   : > { %v1252_v57 = vpop.f32.mrf.mxu0  ;;  %v4667_v59 = vpop.f32.mrf.mxu1 }
 0x163   : > { %v3436_v61 = vpack.c.bf16 %v1252_v57, %v1249_v49  ;;  %v2382_v63 = vadd.f32 %v2381_v51, %v1252_v57  ;;  %v2516_v0 = vmul.f32 %v1252_v57, %v1252_v57  ;;  %v3596_v2 = vpack.c.bf16 %v4667_v59, %v4664_v50  ;;  %v4130_v51 = vld [vmem:[%s4481_s30 + $0x3f4] ss:$8 sps:$4 sm:$0xff]  }
 0x164   : > { %v1254_v3 = vpop.f32.mrf.mxu0  ;;  %v1510_v4 = vpop.f32.mrf.mxu1 }
 0x165   : > { %3740 = vst [vmem:[%s4635_s23 + $0x18] sm:$0xff] %v3436_v61   ;;  %v2643_v5 = vadd.f32 %v2642_v55, %v2516_v0  ;;  %3772 = vst [vmem:[%s4635_s23 + $0x118] sm:$0xff] %v3596_v2  }
 0x166   : > { %v1257_v7 = vpop.f32.mrf.mxu0  ;;  %1448 = vmatmul.mubr.bf16.gmra.mxu0 %v4062_v58  ;;  %v4676_v8 = vpop.f32.mrf.mxu1  ;;  %1704 = vmatmul.mubr.bf16.gmra.mxu1 %v4119_v60 }
 0x167   : > { %v2383_v9 = vadd.f32 %v2382_v63, %v1257_v7  ;;  %v2517_v11 = vmul.f32 %v1257_v7, %v1257_v7  ;;  %1455 = vmatprep.mubr.bf16.mxu0 %v4070_v1  ;;  %1711 = vmatprep.mubr.bf16.mxu1 %v4124_v6  ;;  %v4080_v63 = vld [vmem:[%s4481_s30 + $0x1f0] ss:$8 sps:$4 sm:$0xff]  }
 0x168   : > { %v1259_v12 = vpop.f32.mrf.mxu0  ;;  %v1515_v13 = vpop.f32.mrf.mxu1  ;;  %v4128_v1 = vld [vmem:[%s4481_s30 + $0x3f0] ss:$8 sps:$4 sm:$0xff]  }
 0x169   : > { %v2644_v14 = vadd.f32 %v2643_v5, %v2517_v11 }
 0x16a   : > { %v1260_v15 = vpop.f32.mrf.mxu0  ;;  %v4679_v17 = vpop.f32.mrf.mxu1 }
 0x16b   : > { %v3441_v20 = vpack.c.bf16 %v1260_v15, %v1257_v7  ;;  %v2384_v21 = vadd.f32 %v2383_v9, %v1260_v15  ;;  %v2518_v22 = vmul.f32 %v1260_v15, %v1260_v15  ;;  %v3601_v24 = vpack.c.bf16 %v4679_v17, %v4676_v8 }
 0x16c   : > { %v1262_v25 = vpop.f32.mrf.mxu0  ;;  %v1518_v26 = vpop.f32.mrf.mxu1 }
 0x16d   : > { %3741 = vst [vmem:[%s4635_s23 + $0x20] sm:$0xff] %v3441_v20   ;;  %v2645_v27 = vadd.f32 %v2644_v14, %v2518_v22  ;;  %3773 = vst [vmem:[%s4635_s23 + $0x120] sm:$0xff] %v3601_v24  }
 0x16e   : > { %v1265_v29 = vpop.f32.mrf.mxu0  ;;  %1456 = vmatmul.mubr.bf16.gmra.mxu0 %v4068_v16  ;;  %v4688_v31 = vpop.f32.mrf.mxu1  ;;  %1712 = vmatmul.mubr.bf16.gmra.mxu1 %v4122_v19 }
 0x16f   : > { %v2385_v32 = vadd.f32 %v2384_v21, %v1265_v29  ;;  %v2519_v33 = vmul.f32 %v1265_v29, %v1265_v29  ;;  %1463 = vmatprep.mubr.bf16.mxu0 %v4076_v23  ;;  %1719 = vmatprep.mubr.bf16.mxu1 %v4127_v28 }
 0x170   : > { %v1267_v34 = vpop.f32.mrf.mxu0  ;;  %v1523_v35 = vpop.f32.mrf.mxu1 }
 0x171   : > { %v2646_v36 = vadd.f32 %v2645_v27, %v2519_v33 }
 0x172   : > { %v1268_v37 = vpop.f32.mrf.mxu0  ;;  %v4691_v40 = vpop.f32.mrf.mxu1 }
 0x173   : > { %v3446_v42 = vpack.c.bf16 %v1268_v37, %v1265_v29  ;;  %v2386_v43 = vadd.f32 %v2385_v32, %v1268_v37  ;;  %v2520_v44 = vmul.f32 %v1268_v37, %v1268_v37  ;;  %v3606_v46 = vpack.c.bf16 %v4691_v40, %v4688_v31 }
 0x174   : > { %v1270_v47 = vpop.f32.mrf.mxu0  ;;  %v1526_v48 = vpop.f32.mrf.mxu1 }
 0x175   : > { %3742 = vst [vmem:[%s4635_s23 + $0x28] sm:$0xff] %v3446_v42   ;;  %v2647_v49 = vadd.f32 %v2646_v36, %v2520_v44  ;;  %3774 = vst [vmem:[%s4635_s23 + $0x128] sm:$0xff] %v3606_v46  }
 0x176   : > { %v1273_v52 = vpop.f32.mrf.mxu0  ;;  %1464 = vmatmul.mubr.bf16.gmra.mxu0 %v4074_v39  ;;  %v4700_v53 = vpop.f32.mrf.mxu1  ;;  %1720 = vmatmul.mubr.bf16.gmra.mxu1 %v4125_v41 }
 0x177   : > { %v2387_v54 = vadd.f32 %v2386_v43, %v1273_v52  ;;  %v2521_v55 = vmul.f32 %v1273_v52, %v1273_v52  ;;  %1471 = vmatprep.mubr.bf16.mxu0 %v4082_v45  ;;  %1727 = vmatprep.mubr.bf16.mxu1 %v4130_v51 }
 0x178   : > { %v1275_v57 = vpop.f32.mrf.mxu0  ;;  %v1531_v58 = vpop.f32.mrf.mxu1 }
 0x179   : > { %v2648_v60 = vadd.f32 %v2647_v49, %v2521_v55 }
 0x17a   : > { %v1276_v61 = vpop.f32.mrf.mxu0  ;;  %v4703_v0 = vpop.f32.mrf.mxu1 }
 0x17b   : > { %v3451_v2 = vpack.c.bf16 %v1276_v61, %v1273_v52  ;;  %v2388_v3 = vadd.f32 %v2387_v54, %v1276_v61  ;;  %v2522_v4 = vmul.f32 %v1276_v61, %v1276_v61  ;;  %v3611_v5 = vpack.c.bf16 %v4703_v0, %v4700_v53 }
 0x17c   : > { %v1278_v6 = vpop.f32.mrf.mxu0  ;;  %v1534_v7 = vpop.f32.mrf.mxu1 }
 0x17d   : > { %3743 = vst [vmem:[%s4635_s23 + $0x30] sm:$0xff] %v3451_v2   ;;  %v2649_v9 = vadd.f32 %v2648_v60, %v2522_v4  ;;  %3775 = vst [vmem:[%s4635_s23 + $0x130] sm:$0xff] %v3611_v5  }
 0x17e   : > { %v1281_v11 = vpop.f32.mrf.mxu0  ;;  %1472 = vmatmul.mubr.bf16.gmra.mxu0 %v4080_v63  ;;  %v4710_v12 = vpop.f32.mrf.mxu1  ;;  %1728 = vmatmul.mubr.bf16.gmra.mxu1 %v4128_v1 }
 0x17f   : > { %v2389_v13 = vadd.f32 %v2388_v3, %v1281_v11  ;;  %v2523_v14 = vmul.f32 %v1281_v11, %v1281_v11 }
 0x180   : > { %v1283_v15 = vpop.f32.mrf.mxu0  ;;  %v1539_v16 = vpop.f32.mrf.mxu1 }
 0x181   : > { %v2650_v19 = vadd.f32 %v2649_v9, %v2523_v14 }
 0x182   : > { %v1284_v20 = vpop.f32.mrf.mxu0  ;;  %v4712_v21 = vpop.f32.mrf.mxu1 }
 0x183   : > { %v3456_v22 = vpack.c.bf16 %v1284_v20, %v1281_v11  ;;  %v2390_v23 = vadd.f32 %v2389_v13, %v1284_v20  ;;  %v2524_v24 = vmul.f32 %v1284_v20, %v1284_v20  ;;  %v3616_v25 = vpack.c.bf16 %v4712_v21, %v4710_v12 }
 0x184   : > { %v1286_v26 = vpop.f32.mrf.mxu0  ;;  %v1542_v27 = vpop.f32.mrf.mxu1 }
 0x185   : > { %3744 = vst [vmem:[%s4635_s23 + $0x38] sm:$0xff] %v3456_v22   ;;  %v2651_v28 = vadd.f32 %v2650_v19, %v2524_v24  ;;  %3776 = vst [vmem:[%s4635_s23 + $0x138] sm:$0xff] %v3616_v25  }
 0x186   : > { %v1289_v29 = vpop.f32.mrf.mxu0  ;;  %v4718_v32 = vpop.f32.mrf.mxu1 }
 0x187   : > { %v2391_v33 = vadd.f32 %v2390_v23, %v1289_v29  ;;  %v2525_v34 = vmul.f32 %v1289_v29, %v1289_v29 }
 0x188   : > { %v1291_v35 = vpop.f32.mrf.mxu0  ;;  %v1547_v36 = vpop.f32.mrf.mxu1 }
 0x189   : > { %v2652_v37 = vadd.f32 %v2651_v28, %v2525_v34 }
 0x18a   : > { %v1292_v39 = vpop.f32.mrf.mxu0  ;;  %v4720_v41 = vpop.f32.mrf.mxu1 }
 0x18b   : > { %v3461_v42 = vpack.c.bf16 %v1292_v39, %v1289_v29  ;;  %v2392_v43 = vadd.f32 %v2391_v33, %v1292_v39  ;;  %v2526_v44 = vmul.f32 %v1292_v39, %v1292_v39  ;;  %v3621_v45 = vpack.c.bf16 %v4720_v41, %v4718_v32 }
 0x18c   : > { %v1294_v46 = vpop.f32.mrf.mxu0  ;;  %v1550_v47 = vpop.f32.mrf.mxu1 }
 0x18d   : > { %3745 = vst [vmem:[%s4635_s23 + $0x40] sm:$0xff] %v3461_v42   ;;  %v2653_v48 = vadd.f32 %v2652_v37, %v2526_v44  ;;  %3777 = vst [vmem:[%s4635_s23 + $0x140] sm:$0xff] %v3621_v45  }
 0x18e   : > { %v1297_v49 = vpop.f32.mrf.mxu0  ;;  %v4726_v51 = vpop.f32.mrf.mxu1 }
 0x18f   : > { %v2393_v52 = vadd.f32 %v2392_v43, %v1297_v49  ;;  %v2527_v54 = vmul.f32 %v1297_v49, %v1297_v49 }
 0x190   : > { %v1299_v55 = vpop.f32.mrf.mxu0  ;;  %v1555_v57 = vpop.f32.mrf.mxu1 }
 0x191   : > { %v2654_v58 = vadd.f32 %v2653_v48, %v2527_v54 }
 0x192   : > { %v1300_v60 = vpop.f32.mrf.mxu0  ;;  %v4728_v61 = vpop.f32.mrf.mxu1 }
 0x193   : > { %v3466_v63 = vpack.c.bf16 %v1300_v60, %v1297_v49  ;;  %v2394_v1 = vadd.f32 %v2393_v52, %v1300_v60  ;;  %v2528_v2 = vmul.f32 %v1300_v60, %v1300_v60  ;;  %v3626_v3 = vpack.c.bf16 %v4728_v61, %v4726_v51 }
 0x194   : > { %v1302_v4 = vpop.f32.mrf.mxu0  ;;  %v1558_v5 = vpop.f32.mrf.mxu1 }
 0x195   : > { %3746 = vst [vmem:[%s4635_s23 + $0x48] sm:$0xff] %v3466_v63   ;;  %v2655_v6 = vadd.f32 %v2654_v58, %v2528_v2  ;;  %3778 = vst [vmem:[%s4635_s23 + $0x148] sm:$0xff] %v3626_v3  }
 0x196   : > { %v1305_v7 = vpop.f32.mrf.mxu0  ;;  %v4734_v9 = vpop.f32.mrf.mxu1 }
 0x197   : > { %v2395_v11 = vadd.f32 %v2394_v1, %v1305_v7  ;;  %v2529_v13 = vmul.f32 %v1305_v7, %v1305_v7 }
 0x198   : > { %v1307_v14 = vpop.f32.mrf.mxu0  ;;  %v1563_v15 = vpop.f32.mrf.mxu1 }
 0x199   : > { %v2656_v16 = vadd.f32 %v2655_v6, %v2529_v13 }
 0x19a   : > { %v1308_v19 = vpop.f32.mrf.mxu0  ;;  %v4736_v20 = vpop.f32.mrf.mxu1 }
 0x19b   : > { %v3471_v22 = vpack.c.bf16 %v1308_v19, %v1305_v7  ;;  %v2396_v23 = vadd.f32 %v2395_v11, %v1308_v19  ;;  %v2530_v24 = vmul.f32 %v1308_v19, %v1308_v19  ;;  %v3631_v25 = vpack.c.bf16 %v4736_v20, %v4734_v9 }
 0x19c   : > { %v1310_v26 = vpop.f32.mrf.mxu0  ;;  %v1566_v27 = vpop.f32.mrf.mxu1 }
 0x19d   : > { %3747 = vst [vmem:[%s4635_s23 + $0x50] sm:$0xff] %v3471_v22   ;;  %v2657_v28 = vadd.f32 %v2656_v16, %v2530_v24  ;;  %3779 = vst [vmem:[%s4635_s23 + $0x150] sm:$0xff] %v3631_v25  }
 0x19e   : > { %v1313_v29 = vpop.f32.mrf.mxu0  ;;  %v4742_v33 = vpop.f32.mrf.mxu1 }
 0x19f   : > { %v2397_v34 = vadd.f32 %v2396_v23, %v1313_v29  ;;  %v2531_v35 = vmul.f32 %v1313_v29, %v1313_v29 }
 0x1a0   : > { %v1315_v36 = vpop.f32.mrf.mxu0  ;;  %v1571_v37 = vpop.f32.mrf.mxu1 }
 0x1a1   : > { %v2658_v39 = vadd.f32 %v2657_v28, %v2531_v35 }
 0x1a2   : > { %v1316_v42 = vpop.f32.mrf.mxu0  ;;  %v4744_v43 = vpop.f32.mrf.mxu1 }
 0x1a3   : > { %v3476_v44 = vpack.c.bf16 %v1316_v42, %v1313_v29  ;;  %v2398_v45 = vadd.f32 %v2397_v34, %v1316_v42  ;;  %v2532_v46 = vmul.f32 %v1316_v42, %v1316_v42  ;;  %v3636_v47 = vpack.c.bf16 %v4744_v43, %v4742_v33 }
 0x1a4   : > { %v1318_v48 = vpop.f32.mrf.mxu0  ;;  %v1574_v49 = vpop.f32.mrf.mxu1 }
 0x1a5   : > { %3748 = vst [vmem:[%s4635_s23 + $0x58] sm:$0xff] %v3476_v44   ;;  %v2659_v52 = vadd.f32 %v2658_v39, %v2532_v46  ;;  %3780 = vst [vmem:[%s4635_s23 + $0x158] sm:$0xff] %v3636_v47  }
 0x1a6   : > { %v1321_v54 = vpop.f32.mrf.mxu0  ;;  %v4750_v55 = vpop.f32.mrf.mxu1 }
 0x1a7   : > { %v2399_v57 = vadd.f32 %v2398_v45, %v1321_v54  ;;  %v2533_v58 = vmul.f32 %v1321_v54, %v1321_v54 }
 0x1a8   : > { %v1323_v60 = vpop.f32.mrf.mxu0  ;;  %v1579_v63 = vpop.f32.mrf.mxu1 }
 0x1a9   : > { %v2660_v1 = vadd.f32 %v2659_v52, %v2533_v58 }
 0x1aa   : > { %v1324_v2 = vpop.f32.mrf.mxu0  ;;  %v4752_v3 = vpop.f32.mrf.mxu1 }
 0x1ab   : > { %v3481_v4 = vpack.c.bf16 %v1324_v2, %v1321_v54  ;;  %v2400_v5 = vadd.f32 %v2399_v57, %v1324_v2  ;;  %v2534_v6 = vmul.f32 %v1324_v2, %v1324_v2  ;;  %v3641_v7 = vpack.c.bf16 %v4752_v3, %v4750_v55 }
 0x1ac   : > { %v1326_v11 = vpop.f32.mrf.mxu0  ;;  %v1582_v13 = vpop.f32.mrf.mxu1 }
 0x1ad   : > { %3749 = vst [vmem:[%s4635_s23 + $0x60] sm:$0xff] %v3481_v4   ;;  %v2661_v14 = vadd.f32 %v2660_v1, %v2534_v6  ;;  %3781 = vst [vmem:[%s4635_s23 + $0x160] sm:$0xff] %v3641_v7  }
 0x1ae   : > { %v1329_v15 = vpop.f32.mrf.mxu0  ;;  %v4758_v16 = vpop.f32.mrf.mxu1 }
 0x1af   : > { %v2401_v19 = vadd.f32 %v2400_v5, %v1329_v15  ;;  %v2535_v22 = vmul.f32 %v1329_v15, %v1329_v15 }
 0x1b0   : > { %v1331_v23 = vpop.f32.mrf.mxu0  ;;  %v1587_v24 = vpop.f32.mrf.mxu1 }
 0x1b1   : > { %v2662_v25 = vadd.f32 %v2661_v14, %v2535_v22 }
 0x1b2   : > { %v1332_v26 = vpop.f32.mrf.mxu0  ;;  %v4760_v27 = vpop.f32.mrf.mxu1 }
 0x1b3   : > { %v3486_v28 = vpack.c.bf16 %v1332_v26, %v1329_v15  ;;  %v2402_v29 = vadd.f32 %v2401_v19, %v1332_v26  ;;  %v2536_v34 = vmul.f32 %v1332_v26, %v1332_v26  ;;  %v3646_v35 = vpack.c.bf16 %v4760_v27, %v4758_v16 }
 0x1b4   : > { %v1334_v36 = vpop.f32.mrf.mxu0  ;;  %v1590_v37 = vpop.f32.mrf.mxu1 }
 0x1b5   : > { %3750 = vst [vmem:[%s4635_s23 + $0x68] sm:$0xff] %v3486_v28   ;;  %v2663_v39 = vadd.f32 %v2662_v25, %v2536_v34  ;;  %3782 = vst [vmem:[%s4635_s23 + $0x168] sm:$0xff] %v3646_v35  }
 0x1b6   : > { %v1337_v42 = vpop.f32.mrf.mxu0  ;;  %v4766_v44 = vpop.f32.mrf.mxu1 }
 0x1b7   : > { %v2403_v45 = vadd.f32 %v2402_v29, %v1337_v42  ;;  %v2537_v46 = vmul.f32 %v1337_v42, %v1337_v42 }
 0x1b8   : > { %v1339_v47 = vpop.f32.mrf.mxu0  ;;  %v1595_v48 = vpop.f32.mrf.mxu1 }
 0x1b9   : > { %v2664_v49 = vadd.f32 %v2663_v39, %v2537_v46 }
 0x1ba   : > { %v1340_v52 = vpop.f32.mrf.mxu0  ;;  %v4768_v54 = vpop.f32.mrf.mxu1 }
 0x1bb   : > { %v3491_v57 = vpack.c.bf16 %v1340_v52, %v1337_v42  ;;  %v2404_v58 = vadd.f32 %v2403_v45, %v1340_v52  ;;  %v2538_v60 = vmul.f32 %v1340_v52, %v1340_v52  ;;  %v3651_v63 = vpack.c.bf16 %v4768_v54, %v4766_v44 }
 0x1bc   : > { %v1342_v1 = vpop.f32.mrf.mxu0  ;;  %v1598_v2 = vpop.f32.mrf.mxu1 }
 0x1bd   : > { %3751 = vst [vmem:[%s4635_s23 + $0x70] sm:$0xff] %v3491_v57   ;;  %v2665_v4 = vadd.f32 %v2664_v49, %v2538_v60  ;;  %3783 = vst [vmem:[%s4635_s23 + $0x170] sm:$0xff] %v3651_v63  }
 0x1be   : > { %v1345_v5 = vpop.f32.mrf.mxu0  ;;  %v4774_v6 = vpop.f32.mrf.mxu1 }
 0x1bf   : > { %v2405_v7 = vadd.f32 %v2404_v58, %v1345_v5  ;;  %v2539_v11 = vmul.f32 %v1345_v5, %v1345_v5 }
 0x1c0   : > { %v1347_v13 = vpop.f32.mrf.mxu0  ;;  %v1603_v14 = vpop.f32.mrf.mxu1 }
 0x1c1   : > { %v2666_v15 = vadd.f32 %v2665_v4, %v2539_v11 }
 0x1c2   : > { %v1348_v19 = vpop.f32.mrf.mxu0  ;;  %v4776_v22 = vpop.f32.mrf.mxu1 }
 0x1c3   : > { %v3496_v23 = vpack.c.bf16 %v1348_v19, %v1345_v5  ;;  %v4778_v24 = vadd.f32 %v2405_v7, %v1348_v19  ;;  %v2540_v25 = vmul.f32 %v1348_v19, %v1348_v19  ;;  %v3656_v26 = vpack.c.bf16 %v4776_v22, %v4774_v6 }
 0x1c4   : > { %v1350_v28 = vpop.f32.mrf.mxu0  ;;  %v1606_v29 = vpop.f32.mrf.mxu1 }
 0x1c5   : > { %3752 = vst [vmem:[%s4635_s23 + $0x78] sm:$0xff] %v3496_v23   ;;  %v4783_v34 = vadd.f32 %v2666_v15, %v2540_v25  ;;  %3784 = vst [vmem:[%s4635_s23 + $0x178] sm:$0xff] %v3656_v26  }
 0x1c6   : > { %v4786_v35 = vpop.f32.mrf.mxu0  ;;  %v4788_v36 = vpop.f32.mrf.mxu1 }
 0x1c8   : > { %v1355_v37 = vpop.f32.mrf.mxu0  ;;  %v1611_v39 = vpop.f32.mrf.mxu1 }
 0x1ca   : > { %v4790_v42 = vpop.f32.mrf.mxu0  ;;  %v4792_v45 = vpop.f32.mrf.mxu1 }
 0x1cb   : > { %5423 = vst [vmem:[#allocation15_spill] sm:$0xff] %v4792_v45  ;;  %v3501_v46 = vpack.c.bf16 %v4790_v42, %v4786_v35  ;;  %v3661_v47 = vpack.c.bf16 %v4792_v45, %v4788_v36 }
 0x1cc   : > { %v1358_v48 = vpop.f32.mrf.mxu0  ;;  %v1614_v49 = vpop.f32.mrf.mxu1 }
 0x1cd   : > { %3753 = vst [vmem:[%s4635_s23 + $0x80] sm:$0xff] %v3501_v46   ;;  %3785 = vst [vmem:[%s4635_s23 + $0x180] sm:$0xff] %v3661_v47  }
 0x1ce   : > { %v4800_v52 = vpop.f32.mrf.mxu0  ;;  %v4802_v57 = vpop.f32.mrf.mxu1 }
 0x1cf   : > { %5424 = vst [vmem:[#allocation16_spill] sm:$0xff] %v4802_v57 }
 0x1d0   : > { %v1363_v58 = vpop.f32.mrf.mxu0  ;;  %v1619_v60 = vpop.f32.mrf.mxu1 }
 0x1d2   : > { %v4804_v63 = vpop.f32.mrf.mxu0  ;;  %v4806_v1 = vpop.f32.mrf.mxu1 }
 0x1d3   : > { %5425 = vst [vmem:[#allocation17_spill] sm:$0xff] %v4806_v1  ;;  %v3506_v2 = vpack.c.bf16 %v4804_v63, %v4800_v52  ;;  %v3666_v4 = vpack.c.bf16 %v4806_v1, %v4802_v57 }
 0x1d4   : > { %v1366_v5 = vpop.f32.mrf.mxu0  ;;  %v1622_v7 = vpop.f32.mrf.mxu1 }
 0x1d5   : > { %3754 = vst [vmem:[%s4635_s23 + $0x88] sm:$0xff] %v3506_v2   ;;  %3786 = vst [vmem:[%s4635_s23 + $0x188] sm:$0xff] %v3666_v4  }
 0x1d6   : > { %v4814_v11 = vpop.f32.mrf.mxu0  ;;  %v4816_v13 = vpop.f32.mrf.mxu1 }
 0x1d7   : > { %5426 = vst [vmem:[#allocation18_spill] sm:$0xff] %v4816_v13 }
 0x1d8   : > { %v1371_v14 = vpop.f32.mrf.mxu0  ;;  %v1627_v15 = vpop.f32.mrf.mxu1 }
 0x1da   : > { %v4818_v19 = vpop.f32.mrf.mxu0  ;;  %v4820_v23 = vpop.f32.mrf.mxu1 }
 0x1db   : > { %5427 = vst [vmem:[#allocation19_spill] sm:$0xff] %v4820_v23  ;;  %v3511_v25 = vpack.c.bf16 %v4818_v19, %v4814_v11  ;;  %v3671_v26 = vpack.c.bf16 %v4820_v23, %v4816_v13 }
 0x1dc   : > { %v1374_v28 = vpop.f32.mrf.mxu0  ;;  %v1630_v29 = vpop.f32.mrf.mxu1 }
 0x1dd   : > { %3755 = vst [vmem:[%s4635_s23 + $0x90] sm:$0xff] %v3511_v25   ;;  %3787 = vst [vmem:[%s4635_s23 + $0x190] sm:$0xff] %v3671_v26  }
 0x1de   : > { %v4828_v37 = vpop.f32.mrf.mxu0  ;;  %v4830_v39 = vpop.f32.mrf.mxu1 }
 0x1df   : > { %5428 = vst [vmem:[#allocation20_spill] sm:$0xff] %v4830_v39 }
 0x1e0   : > { %v1379_v46 = vpop.f32.mrf.mxu0  ;;  %v1635_v47 = vpop.f32.mrf.mxu1 }
 0x1e2   : > { %v4832_v48 = vpop.f32.mrf.mxu0  ;;  %v4834_v49 = vpop.f32.mrf.mxu1 }
 0x1e3   : > { %5429 = vst [vmem:[#allocation21_spill] sm:$0xff] %v4834_v49  ;;  %v3516_v58 = vpack.c.bf16 %v4832_v48, %v4828_v37  ;;  %v3676_v60 = vpack.c.bf16 %v4834_v49, %v4830_v39 }
 0x1e4   : > { %v1382_v2 = vpop.f32.mrf.mxu0  ;;  %v1638_v4 = vpop.f32.mrf.mxu1 }
 0x1e5   : > { %3756 = vst [vmem:[%s4635_s23 + $0x98] sm:$0xff] %v3516_v58   ;;  %3788 = vst [vmem:[%s4635_s23 + $0x198] sm:$0xff] %v3676_v60  }
 0x1e6   : > { %v4842_v5 = vpop.f32.mrf.mxu0  ;;  %v4844_v7 = vpop.f32.mrf.mxu1 }
 0x1e7   : > { %5430 = vst [vmem:[#allocation22_spill] sm:$0xff] %v4844_v7 }
 0x1e8   : > { %v1387_v14 = vpop.f32.mrf.mxu0  ;;  %v1643_v15 = vpop.f32.mrf.mxu1 }
 0x1ea   : > { %v4846_v25 = vpop.f32.mrf.mxu0  ;;  %v4848_v26 = vpop.f32.mrf.mxu1 }
 0x1eb   : > { %5431 = vst [vmem:[#allocation23_spill] sm:$0xff] %v4848_v26  ;;  %v3521_v28 = vpack.c.bf16 %v4846_v25, %v4842_v5  ;;  %v3681_v29 = vpack.c.bf16 %v4848_v26, %v4844_v7 }
 0x1ec   : > { %v1390_v46 = vpop.f32.mrf.mxu0  ;;  %v1646_v47 = vpop.f32.mrf.mxu1 }
 0x1ed   : > { %3757 = vst [vmem:[%s4635_s23 + $0xa0] sm:$0xff] %v3521_v28   ;;  %3789 = vst [vmem:[%s4635_s23 + $0x1a0] sm:$0xff] %v3681_v29  }
 0x1ee   : > { %v4856_v58 = vpop.f32.mrf.mxu0  ;;  %v4858_v60 = vpop.f32.mrf.mxu1 }
 0x1ef   : > { %5432 = vst [vmem:[#allocation24_spill] sm:$0xff] %v4858_v60 }
 0x1f0   : > { %v1395_v2 = vpop.f32.mrf.mxu0  ;;  %v1651_v4 = vpop.f32.mrf.mxu1 }
 0x1f2   : > { %v4860_v14 = vpop.f32.mrf.mxu0  ;;  %v4862_v15 = vpop.f32.mrf.mxu1 }
 0x1f3   : > { %5433 = vst [vmem:[#allocation25_spill] sm:$0xff] %v4862_v15  ;;  %v3526_v49 = vpack.c.bf16 %v4860_v14, %v4856_v58  ;;  %v3686_v46 = vpack.c.bf16 %v4862_v15, %v4858_v60  ;;  %v2541_v60 = vmul.f32 %v4786_v35, %v4786_v35 }
 0x1f4   : > { %v1398_v28 = vpop.f32.mrf.mxu0  ;;  %v1654_v29 = vpop.f32.mrf.mxu1 }
 0x1f5   : > { %3758 = vst [vmem:[%s4635_s23 + $0xa8] sm:$0xff] %v3526_v49   ;;  %3790 = vst [vmem:[%s4635_s23 + $0x1a8] sm:$0xff] %v3686_v46  }
 0x1f6   : > { %v4870_v47 = vpop.f32.mrf.mxu0  ;;  %v4872_v2 = vpop.f32.mrf.mxu1 }
 0x1f7   : > { %5434 = vst [vmem:[#allocation26_spill] sm:$0xff] %v4872_v2 }
 0x1f8   : > { %v1403_v4 = vpop.f32.mrf.mxu0  ;;  %v1659_v26 = vpop.f32.mrf.mxu1 }
 0x1fa   : > { %v4874_v7 = vpop.f32.mrf.mxu0  ;;  %v4876_v39 = vpop.f32.mrf.mxu1 }
 0x1fb   : > { %5435 = vst [vmem:[#allocation27_spill] sm:$0xff] %v4876_v39  ;;  %v3531_v23 = vpack.c.bf16 %v4874_v7, %v4870_v47  ;;  %v3691_v15 = vpack.c.bf16 %v4876_v39, %v4872_v2  ;;  %v2543_v2 = vmul.f32 %v4800_v52, %v4800_v52 }
 0x1fc   : > { %v1406_v28 = vpop.f32.mrf.mxu0  ;;  %v1662_v29 = vpop.f32.mrf.mxu1 }
 0x1fd   : > { %3759 = vst [vmem:[%s4635_s23 + $0xb0] sm:$0xff] %v3531_v23   ;;  %3791 = vst [vmem:[%s4635_s23 + $0x1b0] sm:$0xff] %v3691_v15   ;;  %v2542_v15 = vmul.f32 %v4790_v42, %v4790_v42 }
 0x1fe   : > { %v4884_v49 = vpop.f32.mrf.mxu0  ;;  %v4886_v46 = vpop.f32.mrf.mxu1 }
 0x1ff   : > { %5436 = vst [vmem:[#allocation28_spill] sm:$0xff] %v4886_v46 }
 0x200   : > { %v1411_v26 = vpop.f32.mrf.mxu0  ;;  %v1667_v4 = vpop.f32.mrf.mxu1 }
 0x201   : > { %v2407_v26 = vadd.f32 %v4778_v24, %v4786_v35  ;;  %v2668_v4 = vadd.f32 %v4783_v34, %v2541_v60  ;;  %v2545_v60 = vmul.f32 %v4814_v11, %v4814_v11 }
 0x202   : > { %v4890_v13 = vpop.f32.mrf.mxu0  ;;  %v4892_v1 = vpop.f32.mrf.mxu1 }
 0x203   : > { %5437 = vst [vmem:[#allocation29_spill] sm:$0xff] %v4892_v1  ;;  %v3536_v28 = vpack.c.bf16 %v4890_v13, %v4884_v49  ;;  %v3696_v23 = vpack.c.bf16 %v4892_v1, %v4886_v46  ;;  %v2408_v1 = vadd.f32 %v2407_v26, %v4790_v42  ;;  %v2669_v46 = vadd.f32 %v2668_v4, %v2542_v15 }
 0x204   : > { %v1414_v29 = vpop.f32.mrf.mxu0  ;;  %v1670_v39 = vpop.f32.mrf.mxu1 }
 0x205   : > { %3760 = vst [vmem:[%s4635_s23 + $0xb8] sm:$0xff] %v3536_v28   ;;  %3792 = vst [vmem:[%s4635_s23 + $0x1b8] sm:$0xff] %v3696_v23   ;;  %v2544_v39 = vmul.f32 %v4804_v63, %v4804_v63  ;;  %v2409_v35 = vadd.f32 %v2408_v1, %v4800_v52  ;;  %v2670_v34 = vadd.f32 %v2669_v46, %v2543_v2 }
 0x206   : > { %v4907_v57 = vpop.f32.mrf.mxu0  ;;  %v4909_v45 = vpop.f32.mrf.mxu1  ;;  %v2546_v52 = vmul.f32 %v4818_v19, %v4818_v19 }
 0x207   : > { %v2410_v42 = vadd.f32 %v2409_v35, %v4804_v63  ;;  %v2671_v4 = vadd.f32 %v2670_v34, %v2544_v39  ;;  %v2547_v63 = vmul.f32 %v4828_v37, %v4828_v37  ;;  %v2548_v34 = vmul.f32 %v4832_v48, %v4832_v48 }
 0x208   : > { %v1419_v29 = vpop.f32.mrf.mxu0  ;;  %v1675_v24 = vpop.f32.mrf.mxu1 }
 0x209   : > { %v2411_v46 = vadd.f32 %v2410_v42, %v4814_v11  ;;  %v2672_v29 = vadd.f32 %v2671_v4, %v2545_v60 }
 0x20a   : > { %v4917_v28 = vpop.f32.mrf.mxu0  ;;  %v4919_v23 = vpop.f32.mrf.mxu1 }
 0x20b   : > { %5438 = vst [vmem:[#allocation30_spill] sm:$0xff] %v4919_v23  ;;  %v3541_v15 = vpack.c.bf16 %v4917_v28, %v4907_v57  ;;  %v3701_v26 = vpack.c.bf16 %v4919_v23, %v4909_v45  ;;  %v2412_v23 = vadd.f32 %v2411_v46, %v4818_v19  ;;  %v2673_v39 = vadd.f32 %v2672_v29, %v2546_v52 }
 0x20c   : > { %v1422_v1 = vpop.f32.mrf.mxu0  ;;  %v1678_v2 = vpop.f32.mrf.mxu1 }
 0x20d   : > { %3761 = vst [vmem:[%s4635_s23 + $0xc0] sm:$0xff] %v3541_v15   ;;  %3793 = vst [vmem:[%s4635_s23 + $0x1c0] sm:$0xff] %v3701_v26   ;;  %v2413_v42 = vadd.f32 %v2412_v23, %v4828_v37  ;;  %v2674_v60 = vadd.f32 %v2673_v39, %v2547_v63  ;;  %v2549_v15 = vmul.f32 %v4842_v5, %v4842_v5 }
 0x20e   : > { %v4933_v24 = vpop.f32.mrf.mxu0  ;;  %v4935_v35 = vpop.f32.mrf.mxu1  ;;  %v2550_v37 = vmul.f32 %v4846_v25, %v4846_v25 }
 0x20f   : > { %v2414_v19 = vadd.f32 %v2413_v42, %v4832_v48  ;;  %v2675_v46 = vadd.f32 %v2674_v60, %v2548_v34  ;;  %v2551_v48 = vmul.f32 %v4856_v58, %v4856_v58  ;;  %v2552_v60 = vmul.f32 %v4860_v14, %v4860_v14 }
 0x210   : > { %v1427_v1 = vpop.f32.mrf.mxu0  ;;  %v1683_v11 = vpop.f32.mrf.mxu1 }
 0x211   : > { %v2415_v63 = vadd.f32 %v2414_v19, %v4842_v5  ;;  %v2676_v39 = vadd.f32 %v2675_v46, %v2549_v15 }
 0x212   : > { %v4943_v26 = vpop.f32.mrf.mxu0  ;;  %v4945_v4 = vpop.f32.mrf.mxu1 }
 0x213   : > { %v3546_v52 = vpack.c.bf16 %v4943_v26, %v4933_v24  ;;  %v3706_v2 = vpack.c.bf16 %v4945_v4, %v4935_v35  ;;  %v2416_v42 = vadd.f32 %v2415_v63, %v4846_v25  ;;  %v2677_v34 = vadd.f32 %v2676_v39, %v2550_v37 }
 0x214   : > { %v1430_v23 = vpop.f32.mrf.mxu0  ;;  %v1686_v29 = vpop.f32.mrf.mxu1 }
 0x215   : > { %3762 = vst [vmem:[%s4635_s23 + $0xc8] sm:$0xff] %v3546_v52   ;;  %3794 = vst [vmem:[%s4635_s23 + $0x1c8] sm:$0xff] %v3706_v2   ;;  %v2417_v19 = vadd.f32 %v2416_v42, %v4856_v58  ;;  %v2678_v15 = vadd.f32 %v2677_v34, %v2551_v48  ;;  %v2553_v52 = vmul.f32 %v4870_v47, %v4870_v47 }
 0x216   : > { %v4959_v1 = vpop.f32.mrf.mxu0  ;;  %v4961_v11 = vpop.f32.mrf.mxu1  ;;  %v2554_v58 = vmul.f32 %v4874_v7, %v4874_v7 }
 0x217   : > { %v2418_v25 = vadd.f32 %v2417_v19, %v4860_v14  ;;  %v2679_v63 = vadd.f32 %v2678_v15, %v2552_v60  ;;  %v2555_v14 = vmul.f32 %v4884_v49, %v4884_v49  ;;  %v2556_v60 = vmul.f32 %v4890_v13, %v4890_v13 }
 0x218   : > { %v1435_v23 = vpop.f32.mrf.mxu0  ;;  %v1691_v5 = vpop.f32.mrf.mxu1 }
 0x219   : > { %v2419_v42 = vadd.f32 %v2418_v25, %v4870_v47  ;;  %v2680_v34 = vadd.f32 %v2679_v63, %v2553_v52  ;;  %v2557_v52 = vmul.f32 %v4907_v57, %v4907_v57 }
 0x21a   : > { %v4969_v2 = vpop.f32.mrf.mxu0  ;;  %v4971_v46 = vpop.f32.mrf.mxu1 }
 0x21b   : > { %5439 = vst [vmem:[#allocation31_spill] sm:$0xff] %v4971_v46  ;;  %v3551_v37 = vpack.c.bf16 %v4969_v2, %v4959_v1  ;;  %v3711_v29 = vpack.c.bf16 %v4971_v46, %v4961_v11  ;;  %v2420_v19 = vadd.f32 %v2419_v42, %v4874_v7  ;;  %v2681_v46 = vadd.f32 %v2680_v34, %v2554_v58 }
 0x21c   : > { %v1438_v39 = vpop.f32.mrf.mxu0  ;;  %v1694_v48 = vpop.f32.mrf.mxu1  ;;  %v2558_v42 = vmul.f32 %v4917_v28, %v4917_v28 }
 0x21d   : > { %3763 = vst [vmem:[%s4635_s23 + $0xd0] sm:$0xff] %v3551_v37   ;;  %3795 = vst [vmem:[%s4635_s23 + $0x1d0] sm:$0xff] %v3711_v29   ;;  %v2421_v47 = vadd.f32 %v2420_v19, %v4884_v49  ;;  %v2682_v25 = vadd.f32 %v2681_v46, %v2555_v14  ;;  %v2559_v14 = vmul.f32 %v4933_v24, %v4933_v24 }
 0x21e   : > { %v1441_v23 = vpop.f32.mrf.mxu0  ;;  %v4985_v5 = vpop.f32.mrf.mxu1 }
 0x21f   : > { %v2422_v63 = vadd.f32 %v2421_v47, %v4890_v13  ;;  %v2683_v48 = vadd.f32 %v2682_v25, %v2556_v60  ;;  %v2560_v60 = vmul.f32 %v4943_v26, %v4943_v26 }
 0x220   : > { %v1443_v15 = vpop.f32.mrf.mxu0  ;;  %v1699_v39 = vpop.f32.mrf.mxu1 }
 0x221   : > { %v2423_v49 = vadd.f32 %v2422_v63, %v4907_v57  ;;  %v2684_v46 = vadd.f32 %v2683_v48, %v2557_v52  ;;  %v2561_v52 = vmul.f32 %v4959_v1, %v4959_v1 }
 0x222   : > { %v1444_v37 = vpop.f32.mrf.mxu0  ;;  %v4993_v29 = vpop.f32.mrf.mxu1 }
 0x223   : > { %5440 = vst [vmem:[#allocation32_spill] sm:$0xff] %v4993_v29  ;;  %v3556_v7 = vpack.c.bf16 %v1444_v37, %v1441_v23  ;;  %v3716_v58 = vpack.c.bf16 %v4993_v29, %v4985_v5  ;;  %v2424_v39 = vadd.f32 %v2423_v49, %v4917_v28  ;;  %v2685_v47 = vadd.f32 %v2684_v46, %v2558_v42 }
 0x224   : > { %v1446_v34 = vpop.f32.mrf.mxu0  ;;  %v1702_v15 = vpop.f32.mrf.mxu1  ;;  %v2562_v49 = vmul.f32 %v4969_v2, %v4969_v2  ;;  %v2564_v29 = vmul.f32 %v1444_v37, %v1444_v37 }
 0x225   : > { %3764 = vst [vmem:[%s4635_s23 + $0xd8] sm:$0xff] %v3556_v7   ;;  %3796 = vst [vmem:[%s4635_s23 + $0x1d8] sm:$0xff] %v3716_v58   ;;  %v2425_v57 = vadd.f32 %v2424_v39, %v4933_v24  ;;  %v2686_v63 = vadd.f32 %v2685_v47, %v2559_v14  ;;  %v2563_v39 = vmul.f32 %v1441_v23, %v1441_v23 }
 0x226   : > { %v1449_v19 = vpop.f32.mrf.mxu0  ;;  %v5005_v13 = vpop.f32.mrf.mxu1 }
 0x227   : > { %5441 = vst [vmem:[#allocation33_spill] sm:$0xff] %v5005_v13  ;;  %v2426_v48 = vadd.f32 %v2425_v57, %v4943_v26  ;;  %v2687_v15 = vadd.f32 %v2686_v63, %v2560_v60 }
 0x228   : > { %v1451_v25 = vpop.f32.mrf.mxu0  ;;  %v1707_v34 = vpop.f32.mrf.mxu1 }
 0x229   : > { %v2427_v24 = vadd.f32 %v2426_v48, %v4959_v1  ;;  %v2688_v14 = vadd.f32 %v2687_v15, %v2561_v52 }
 0x22a   : > { %v1452_v7 = vpop.f32.mrf.mxu0  ;;  %v5013_v58 = vpop.f32.mrf.mxu1 }
 0x22b   : > { %5442 = vst [vmem:[#allocation34_spill] sm:$0xff] %v5013_v58  ;;  %v3561_v28 = vpack.c.bf16 %v1452_v7, %v1449_v19  ;;  %v3721_v42 = vpack.c.bf16 %v5013_v58, %v5005_v13  ;;  %v2428_v26 = vadd.f32 %v2427_v24, %v4969_v2  ;;  %v2689_v57 = vadd.f32 %v2688_v14, %v2562_v49 }
 0x22c   : > { %v1454_v46 = vpop.f32.mrf.mxu0  ;;  %v1710_v25 = vpop.f32.mrf.mxu1  ;;  %v2566_v15 = vmul.f32 %v1452_v7, %v1452_v7 }
 0x22d   : > { %3765 = vst [vmem:[%s4635_s23 + $0xe0] sm:$0xff] %v3561_v28   ;;  %3797 = vst [vmem:[%s4635_s23 + $0x1e0] sm:$0xff] %v3721_v42   ;;  %v2429_v58 = vadd.f32 %v2428_v26, %v1441_v23  ;;  %v2690_v46 = vadd.f32 %v2689_v57, %v2563_v39  ;;  %v2565_v25 = vmul.f32 %v1449_v19, %v1449_v19 }
 0x22e   : > { %v1457_v47 = vpop.f32.mrf.mxu0  ;;  %v5023_v34 = vpop.f32.mrf.mxu1 }
 0x22f   : > { %v2430_v48 = vadd.f32 %v2429_v58, %v1444_v37  ;;  %v2691_v42 = vadd.f32 %v2690_v46, %v2564_v29 }
 0x230   : > { %v1459_v60 = vpop.f32.mrf.mxu0  ;;  %v1715_v63 = vpop.f32.mrf.mxu1 }
 0x231   : > { %v2431_v24 = vadd.f32 %v2430_v48, %v1449_v19  ;;  %v2692_v14 = vadd.f32 %v2691_v42, %v2565_v25  ;;  %v2567_v60 = vmul.f32 %v1457_v47, %v1457_v47 }
 0x232   : > { %v1460_v13 = vpop.f32.mrf.mxu0  ;;  %v5026_v1 = vpop.f32.mrf.mxu1 }
 0x233   : > { %5443 = vst [vmem:[#allocation35_spill] sm:$0xff] %v5026_v1  ;;  %v3566_v52 = vpack.c.bf16 %v1460_v13, %v1457_v47  ;;  %v3726_v28 = vpack.c.bf16 %v5026_v1, %v5023_v34  ;;  %v2432_v26 = vadd.f32 %v2431_v24, %v1452_v7  ;;  %v2693_v57 = vadd.f32 %v2692_v14, %v2566_v15 }
 0x234   : > { %v1462_v2 = vpop.f32.mrf.mxu0  ;;  %v1718_v49 = vpop.f32.mrf.mxu1  ;;  %v2568_v63 = vmul.f32 %v1460_v13, %v1460_v13 }
 0x235   : > { %3766 = vst [vmem:[%s4635_s23 + $0xe8] sm:$0xff] %v3566_v52   ;;  %3798 = vst [vmem:[%s4635_s23 + $0x1e8] sm:$0xff] %v3726_v28   ;;  %v2433_v1 = vadd.f32 %v2432_v26, %v1457_v47  ;;  %v2694_v29 = vadd.f32 %v2693_v57, %v2567_v60 }
 0x236   : > { %v1465_v23 = vpop.f32.mrf.mxu0  ;;  %v5032_v39 = vpop.f32.mrf.mxu1 }
 0x237   : > { %v2569_v46 = vmul.f32 %v1465_v23, %v1465_v23  ;;  %v2434_v19 = vadd.f32 %v2433_v1, %v1460_v13  ;;  %v2695_v52 = vadd.f32 %v2694_v29, %v2568_v63 }
 0x238   : > { %v1467_v37 = vpop.f32.mrf.mxu0  ;;  %v1723_v58 = vpop.f32.mrf.mxu1 }
 0x239   : > { %v2435_v15 = vadd.f32 %v2434_v19, %v1465_v23  ;;  %v2696_v24 = vadd.f32 %v2695_v52, %v2569_v46 }
 0x23a   : > { %v1468_v2 = vpop.f32.mrf.mxu0  ;;  %v5034_v49 = vpop.f32.mrf.mxu1 }
 0x23b   : > { %v3571_v48 = vpack.c.bf16 %v1468_v2, %v1465_v23  ;;  %v3731_v25 = vpack.c.bf16 %v5034_v49, %v5032_v39  ;;  %v2570_v28 = vmul.f32 %v1468_v2, %v1468_v2  ;;  %v2436_v60 = vadd.f32 %v2435_v15, %v1468_v2 }
 0x23c   : > { %v1470_v7 = vpop.f32.mrf.mxu0  ;;  %v1726_v42 = vpop.f32.mrf.mxu1  ;;  %v2573_v2 = vmul.f32 %v4625_v56, %v4625_v56 }
 0x23d   : > { %3767 = vst [vmem:[%s4635_s23 + $0xf0] sm:$0xff] %v3571_v48   ;;  %3799 = vst [vmem:[%s4635_s23 + $0x1f0] sm:$0xff] %v3731_v25   ;;  %v2697_v57 = vadd.f32 %v2696_v24, %v2570_v28  ;;  %v2574_v42 = vmul.f32 %v4629_v62, %v4629_v62 }
 0x23e   : > { %v1473_v14 = vpop.f32.mrf.mxu0  ;;  %v5040_v47 = vpop.f32.mrf.mxu1 }
 0x23f   : > { %v2571_v26 = vmul.f32 %v1473_v14, %v1473_v14  ;;  %v2437_v37 = vadd.f32 %v2436_v60, %v1473_v14 }
 0x240   : > { %v1475_v13 = vpop.f32.mrf.mxu0  ;;  %v1731_v1 = vpop.f32.mrf.mxu1 }
 0x241   : > { %v2698_v58 = vadd.f32 %v2697_v57, %v2571_v26  ;;  %v2576_v57 = vmul.f32 %v4643_v18, %v4643_v18  ;;  %v2577_v1 = vmul.f32 %v4652_v30, %v4652_v30 }
 0x242   : > { %v1476_v63 = vpop.f32.mrf.mxu0  ;;  %v5042_v29 = vpop.f32.mrf.mxu1 }
 0x243   : > { %v3576_v7 = vpack.c.bf16 %v1476_v63, %v1473_v14  ;;  %v2438_v23 = vadd.f32 %v2437_v37, %v1476_v63  ;;  %v2572_v19 = vmul.f32 %v1476_v63, %v1476_v63  ;;  %v3736_v46 = vpack.c.bf16 %v5042_v29, %v5040_v47 }
 0x244   : > { %v1478_v48 = vpop.f32.mrf.mxu0  ;;  %v1734_v25 = vpop.f32.mrf.mxu1  ;;  %v2575_v14 = vmul.f32 %v4640_v10, %v4640_v10 }
 0x245   : > { %3768 = vst [vmem:[%s4635_s23 + $0xf8] sm:$0xff] %v3576_v7   ;;  %v2439_v52 = vadd.f32 %v2438_v23, %v4625_v56  ;;  %v2699_v28 = vadd.f32 %v2698_v58, %v2572_v19  ;;  %3800 = vst [vmem:[%s4635_s23 + $0x1f8] sm:$0xff] %v3736_v46   ;;  %v2578_v58 = vmul.f32 %v4655_v38, %v4655_v38 }
 0x246   : > { %v2579_v7 = vmul.f32 %v4664_v50, %v4664_v50  ;;  %v2580_v19 = vmul.f32 %v4667_v59, %v4667_v59  ;;  %v2581_v48 = vmul.f32 %v4676_v8, %v4676_v8 }
 0x247   : > { %v2440_v15 = vadd.f32 %v2439_v52, %v4629_v62  ;;  %v2700_v24 = vadd.f32 %v2699_v28, %v2573_v2 }
 0x249   : > { %v2441_v60 = vadd.f32 %v2440_v15, %v4640_v10  ;;  %v2701_v26 = vadd.f32 %v2700_v24, %v2574_v42 }
 0x24b   : > { %v2442_v13 = vadd.f32 %v2441_v60, %v4643_v18  ;;  %v2702_v56 = vadd.f32 %v2701_v26, %v2575_v14 }
 0x24d   : > { %v2443_v37 = vadd.f32 %v2442_v13, %v4652_v30  ;;  %v2703_v62 = vadd.f32 %v2702_v56, %v2576_v57 }
 0x24f   : > { %v2444_v10 = vadd.f32 %v2443_v37, %v4655_v38  ;;  %v2704_v63 = vadd.f32 %v2703_v62, %v2577_v1 }
 0x251   : > { %v2445_v18 = vadd.f32 %v2444_v10, %v4664_v50  ;;  %v2705_v23 = vadd.f32 %v2704_v63, %v2578_v58  ;;  %v2582_v50 = vmul.f32 %v4679_v17, %v4679_v17 }
 0x253   : > { %v2446_v30 = vadd.f32 %v2445_v18, %v4667_v59  ;;  %v2706_v46 = vadd.f32 %v2705_v23, %v2579_v7 }
 0x255   : > { %v2447_v38 = vadd.f32 %v2446_v30, %v4676_v8  ;;  %v2707_v25 = vadd.f32 %v2706_v46, %v2580_v19  ;;  %v2583_v8 = vmul.f32 %v4688_v31, %v4688_v31 }
 0x257   : > { %v2448_v59 = vadd.f32 %v2447_v38, %v4679_v17  ;;  %v2708_v2 = vadd.f32 %v2707_v25, %v2581_v48 }
 0x259   : > { %v2449_v52 = vadd.f32 %v2448_v59, %v4688_v31  ;;  %v2709_v28 = vadd.f32 %v2708_v2, %v2582_v50 }
 0x25a   : > { %4198 = shalt.err (!%p4195_p2)
}
 0x25b   : > { %s4199_s28 = scalar_lea.hbm %s5079_s7, 8192  ;;  %s4203_s22 = scalar_lea.hbm %s5364_s2, 16384 }
 0x25c   : > { %p4200_p6 = scmp.ne.s32.totalorder %s5079_s7, %s4199_s28  ;;  %p4204_p11 = scmp.lt.s32.totalorder %s5079_s7, %s5364_s2 }
 0x25d   : > { %p4205_p1 = scmp.lt.s32.totalorder %s4203_s22, %s4199_s28 }
 0x25e   : > { %p4201_p9 = pnand %p4200_p6, %p4449_p0 }
 0x25f   : > { %p4206_p8 = por %p4205_p1, %p4204_p11 }
 0x260   : > { %p4202_p13 = pneg %p4201_p9 }
 0x262   : > { %p4207_p4 = pnand %p4206_p8, %p4202_p13 }
 0x264   : > { %4210 = shalt.err (!%p4207_p4)
}
 0x265   : > { %s4335_s5 = smov 64   ;;  %s4336_s6 = smov 4   ;;  %v2584_v17 = vmul.f32 %v4691_v40, %v4691_v40  ;;  %v2450_v31 = vadd.f32 %v2449_v52, %v4691_v40  ;;  %v2710_v42 = vadd.f32 %v2709_v28, %v2583_v8  ;;  %v2585_v15 = vmul.f32 %v4700_v53, %v4700_v53 }
 0x266   : > { %3839 = dma.vmem_to_hbm [thread:$0]  (%p4449_p0), %s5085_s8, 8192, %s5079_s7, %s2773_s12, %s4335_s5, %s4335_s5, %s4336_s6   ;;  %v2586_v60 = vmul.f32 %v4703_v0, %v4703_v0  ;;  %v2587_v13 = vmul.f32 %v4710_v12, %v4710_v12  ;;  %v2588_v40 = vmul.f32 %v4712_v21, %v4712_v21 }
 0x267   : > { %v2451_v24 = vadd.f32 %v2450_v31, %v4700_v53  ;;  %v2711_v14 = vadd.f32 %v2710_v42, %v2584_v17  ;;  %v2589_v53 = vmul.f32 %v4718_v32, %v4718_v32  ;;  %s3004_s7 = sshll.u32 %s4477_s13, 3  ;;  %s2777_s8 = sand.u32 1, %s4395_s21  }
 0x268   : > { %s3283_s12 = sshll.u32 %s4317_s18, 7  ;;  %s282_s9 = scalar_lea.vmem [#allocation8], %s3004_s7 }
 0x269   : > { %v2452_v26 = vadd.f32 %v2451_v24, %v4703_v0  ;;  %v2712_v57 = vadd.f32 %v2711_v14, %v2585_v15  ;;  %v2590_v0 = vmul.f32 %v4720_v41, %v4720_v41  ;;  %s2814_s27 = sshll.u32 %s282_s9, 4  ;;  %s5275_s10 = scalar_lea.vmem [#allocation10], %s3004_s7  ;;  %s5283_s27 = int_to_ptr.vmem [resolvable:$true] %s2814_s27 }
 0x26a   : > { %s2828_s14 = sshll.u32 %s5275_s10, 4  ;;  %s5281_s1 = scalar_lea.hbm %s5365_s3, %s3283_s12  ;;  %s5290_s14 = int_to_ptr.vmem [resolvable:$true] %s2828_s14 }
 0x26b   : > { %v2453_v56 = vadd.f32 %v2452_v26, %v4710_v12  ;;  %v2713_v1 = vadd.f32 %v2712_v57, %v2586_v60  ;;  %v2591_v12 = vmul.f32 %v4726_v51, %v4726_v51  ;;  %s5288_s30 = scalar_lea.hbm %s5366_s4, %s3283_s12  ;;  %s5292_s22 = scalar_lea.sflag [#allocation9], %s2777_s8 }
 0x26c   : > { %s4211_s23 = scalar_lea.vmem %s5283_s27, 128  ;;  %s4337_s25 = smov [#allocation8]  }
 0x26d   : > { %v2454_v37 = vadd.f32 %v2453_v56, %v4712_v21  ;;  %v2714_v62 = vadd.f32 %v2713_v1, %v2587_v13  ;;  %v2592_v21 = vmul.f32 %v4728_v61, %v4728_v61  ;;  %p4212_p10 = scmp.ne.s32.totalorder %s5283_s27, %s4211_s23  ;;  %s4215_s5 = sshll.u32 %s4337_s25, 4  ;;  %s4216_s5 = int_to_ptr.vmem [resolvable:$false] %s4215_s5 }
 0x26e   : > { %s4217_s6 = scalar_lea.vmem %s4216_s5, 256  ;;  %p4218_p5 = scmp.lt.s32.totalorder %s5283_s27, %s4216_s5 }
 0x26f   : > { %v2455_v58 = vadd.f32 %v2454_v37, %v4718_v32  ;;  %v2715_v10 = vadd.f32 %v2714_v62, %v2588_v40  ;;  %v2593_v32 = vmul.f32 %v4734_v9, %v4734_v9  ;;  %p4213_p12 = pnand %p4212_p10, %p4449_p0  ;;  %p4219_p7 = scmp.lt.s32.totalorder %s4217_s6, %s4211_s23 }
 0x271   : > { %v2716_v63 = vadd.f32 %v2715_v10, %v2589_v53  ;;  %v2456_v7 = vadd.f32 %v2455_v58, %v4720_v41  ;;  %v2594_v41 = vmul.f32 %v4736_v20, %v4736_v20  ;;  %p4214_p3 = pneg %p4213_p12  ;;  %p4220_p2 = por %p4219_p7, %p4218_p5 }
 0x273   : > { %v2457_v18 = vadd.f32 %v2456_v7, %v4726_v51  ;;  %v2717_v23 = vadd.f32 %v2716_v63, %v2590_v0  ;;  %v2595_v51 = vmul.f32 %v4742_v33, %v4742_v33  ;;  %v5445_v63 = vld [vmem:[#allocation16_spill] sm:$0xff]  ;;  %p4221_p6 = pnand %p4220_p2, %p4214_p3 }
 0x275   : > { %v2458_v19 = vadd.f32 %v2457_v18, %v4728_v61  ;;  %v2718_v30 = vadd.f32 %v2717_v23, %v2591_v12  ;;  %v2596_v61 = vmul.f32 %v4744_v43, %v4744_v43  ;;  %v2607_v12 = vmul.f32 %v5445_v63, %v5445_v63  ;;  %v5446_v18 = vld [vmem:[#allocation17_spill] sm:$0xff] }
 0x277   : > { %v2459_v46 = vadd.f32 %v2458_v19, %v4734_v9  ;;  %v2719_v48 = vadd.f32 %v2718_v30, %v2592_v21  ;;  %v2597_v9 = vmul.f32 %v4750_v55, %v4750_v55  ;;  %v2608_v21 = vmul.f32 %v5446_v18, %v5446_v18  ;;  %v5447_v19 = vld [vmem:[#allocation18_spill] sm:$0xff] }
 0x279   : > { %v2460_v38 = vadd.f32 %v2459_v46, %v4736_v20  ;;  %v2720_v25 = vadd.f32 %v2719_v48, %v2593_v32  ;;  %v2598_v20 = vmul.f32 %v4752_v3, %v4752_v3  ;;  %v2609_v32 = vmul.f32 %v5447_v19, %v5447_v19  ;;  %v5448_v48 = vld [vmem:[#allocation19_spill] sm:$0xff] }
 0x27b   : > { %v2461_v50 = vadd.f32 %v2460_v38, %v4742_v33  ;;  %v2721_v59 = vadd.f32 %v2720_v25, %v2594_v41  ;;  %v2599_v33 = vmul.f32 %v4758_v16, %v4758_v16  ;;  %v2610_v38 = vmul.f32 %v5448_v48, %v5448_v48 }
 0x27d   : > { %v2462_v2 = vadd.f32 %v2461_v50, %v4744_v43  ;;  %v2722_v8 = vadd.f32 %v2721_v59, %v2595_v51  ;;  %v2600_v43 = vmul.f32 %v4760_v27, %v4760_v27  ;;  %v5449_v51 = vld [vmem:[#allocation20_spill] sm:$0xff] }
 0x27e   : > { %v2611_v59 = vmul.f32 %v5449_v51, %v5449_v51 }
 0x27f   : > { %v2463_v52 = vadd.f32 %v2462_v2, %v4750_v55  ;;  %v2723_v28 = vadd.f32 %v2722_v8, %v2596_v61  ;;  %v2601_v55 = vmul.f32 %v4766_v44, %v4766_v44  ;;  %v5450_v2 = vld [vmem:[#allocation21_spill] sm:$0xff] }
 0x281   : > { %v2464_v17 = vadd.f32 %v2463_v52, %v4752_v3  ;;  %v2724_v31 = vadd.f32 %v2723_v28, %v2597_v9  ;;  %v2602_v3 = vmul.f32 %v4768_v54, %v4768_v54  ;;  %v2612_v9 = vmul.f32 %v5450_v2, %v5450_v2  ;;  %v5451_v28 = vld [vmem:[#allocation22_spill] sm:$0xff] }
 0x283   : > { %v2465_v42 = vadd.f32 %v2464_v17, %v4758_v16  ;;  %v2725_v15 = vadd.f32 %v2724_v31, %v2598_v20  ;;  %v2603_v16 = vmul.f32 %v4774_v6, %v4774_v6  ;;  %v2613_v17 = vmul.f32 %v5451_v28, %v5451_v28 }
 0x285   : > { %v2466_v24 = vadd.f32 %v2465_v42, %v4760_v27  ;;  %v2726_v14 = vadd.f32 %v2725_v15, %v2599_v33  ;;  %v2604_v27 = vmul.f32 %v4776_v22, %v4776_v22  ;;  %v5452_v33 = vld [vmem:[#allocation23_spill] sm:$0xff] }
 0x286   : > { %v2614_v15 = vmul.f32 %v5452_v33, %v5452_v33 }
 0x287   : > { %v2467_v60 = vadd.f32 %v2466_v24, %v4766_v44  ;;  %v2727_v26 = vadd.f32 %v2726_v14, %v2600_v43  ;;  %v2605_v44 = vmul.f32 %v4788_v36, %v4788_v36  ;;  %v5453_v24 = vld [vmem:[#allocation24_spill] sm:$0xff] }
 0x289   : > { %v2468_v57 = vadd.f32 %v2467_v60, %v4768_v54  ;;  %v2728_v13 = vadd.f32 %v2727_v26, %v2601_v55  ;;  %v5444_v54 = vld [vmem:[#allocation15_spill] sm:$0xff]  ;;  %v2615_v55 = vmul.f32 %v5453_v24, %v5453_v24  ;;  %v5454_v26 = vld [vmem:[#allocation25_spill] sm:$0xff] }
 0x28a   : > { %v2606_v10 = vmul.f32 %v5444_v54, %v5444_v54 }
 0x28b   : > { %v2469_v56 = vadd.f32 %v2468_v57, %v4774_v6  ;;  %v2729_v1 = vadd.f32 %v2728_v13, %v2602_v3  ;;  %v2616_v57 = vmul.f32 %v5454_v26, %v5454_v26 }
 0x28d   : > { %v2470_v40 = vadd.f32 %v2469_v56, %v4776_v22  ;;  %v2730_v37 = vadd.f32 %v2729_v1, %v2603_v16  ;;  %v5455_v16 = vld [vmem:[#allocation26_spill] sm:$0xff] }
 0x28e   : > { %v2617_v1 = vmul.f32 %v5455_v16, %v5455_v16 }
 0x28f   : > { %v2471_v62 = vadd.f32 %v2470_v40, %v4788_v36  ;;  %v2731_v53 = vadd.f32 %v2730_v37, %v2604_v27  ;;  %v5456_v40 = vld [vmem:[#allocation27_spill] sm:$0xff] }
 0x291   : > { %v2472_v58 = vadd.f32 %v2471_v62, %v5444_v54  ;;  %v2732_v0 = vadd.f32 %v2731_v53, %v2605_v44  ;;  %v2618_v44 = vmul.f32 %v5456_v40, %v5456_v40  ;;  %v5457_v53 = vld [vmem:[#allocation28_spill] sm:$0xff] }
 0x293   : > { %v2733_v6 = vadd.f32 %v2732_v0, %v2606_v10  ;;  %v2473_v7 = vadd.f32 %v2472_v58, %v5445_v63  ;;  %v2619_v58 = vmul.f32 %v5457_v53, %v5457_v53  ;;  %v5458_v0 = vld [vmem:[#allocation29_spill] sm:$0xff] }
 0x294   : > { %v2620_v63 = vmul.f32 %v5458_v0, %v5458_v0 }
 0x295   : > { %v2734_v22 = vadd.f32 %v2733_v6, %v2607_v12  ;;  %v2474_v23 = vadd.f32 %v2473_v7, %v5446_v18 }
 0x297   : > { %v2735_v36 = vadd.f32 %v2734_v22, %v2608_v21  ;;  %v2475_v30 = vadd.f32 %v2474_v23, %v5447_v19  ;;  %v2621_v22 = vmul.f32 %v4909_v45, %v4909_v45  ;;  %v5459_v23 = vld [vmem:[#allocation30_spill] sm:$0xff] }
 0x299   : > { %v2736_v46 = vadd.f32 %v2735_v36, %v2609_v32  ;;  %v2476_v41 = vadd.f32 %v2475_v30, %v5448_v48  ;;  %v2622_v36 = vmul.f32 %v5459_v23, %v5459_v23  ;;  %v2623_v32 = vmul.f32 %v4935_v35, %v4935_v35 }
 0x29b   : > { %v2737_v25 = vadd.f32 %v2736_v46, %v2610_v38  ;;  %v2477_v50 = vadd.f32 %v2476_v41, %v5449_v51  ;;  %v2624_v41 = vmul.f32 %v4945_v4, %v4945_v4 }
 0x29d   : > { %v2738_v61 = vadd.f32 %v2737_v25, %v2611_v59  ;;  %v2478_v8 = vadd.f32 %v2477_v50, %v5450_v2  ;;  %v2625_v25 = vmul.f32 %v4961_v11, %v4961_v11  ;;  %v5460_v50 = vld [vmem:[#allocation31_spill] sm:$0xff] }
 0x29f   : > { %v2739_v52 = vadd.f32 %v2738_v61, %v2612_v9  ;;  %v2479_v20 = vadd.f32 %v2478_v8, %v5451_v28  ;;  %v2626_v61 = vmul.f32 %v5460_v50, %v5460_v50  ;;  %v2627_v8 = vmul.f32 %v4985_v5, %v4985_v5 }
 0x2a1   : > { %v2740_v31 = vadd.f32 %v2739_v52, %v2613_v17  ;;  %v2480_v42 = vadd.f32 %v2479_v20, %v5452_v33 }
 0x2a3   : > { %v2741_v43 = vadd.f32 %v2740_v31, %v2614_v15  ;;  %v2481_v14 = vadd.f32 %v2480_v42, %v5453_v24  ;;  %v5463_v42 = vld [vmem:[#allocation34_spill] sm:$0xff] }
 0x2a5   : > { %v2742_v60 = vadd.f32 %v2741_v43, %v2615_v55  ;;  %v2482_v3 = vadd.f32 %v2481_v14, %v5454_v26  ;;  %v2630_v43 = vmul.f32 %v5463_v42, %v5463_v42  ;;  %v2631_v14 = vmul.f32 %v5023_v34, %v5023_v34 }
 0x2a7   : > { %v2743_v13 = vadd.f32 %v2742_v60, %v2616_v57  ;;  %v2483_v56 = vadd.f32 %v2482_v3, %v5455_v16  ;;  %v5464_v60 = vld [vmem:[#allocation35_spill] sm:$0xff]  ;;  %v2633_v16 = vmul.f32 %v5032_v39, %v5032_v39 }
 0x2a8   : > { %v2632_v3 = vmul.f32 %v5464_v60, %v5464_v60 }
 0x2a9   : > { %v2744_v27 = vadd.f32 %v2743_v13, %v2617_v1  ;;  %v2484_v37 = vadd.f32 %v2483_v56, %v5456_v40 }
 0x2ab   : > { %v2745_v62 = vadd.f32 %v2744_v27, %v2618_v44  ;;  %v2485_v54 = vadd.f32 %v2484_v37, %v5457_v53  ;;  %v2634_v27 = vmul.f32 %v5034_v49, %v5034_v49  ;;  %v2635_v37 = vmul.f32 %v5040_v47, %v5040_v47 }
 0x2ad   : > { %v2746_v10 = vadd.f32 %v2745_v62, %v2619_v58  ;;  %v2486_v6 = vadd.f32 %v2485_v54, %v5458_v0 }
 0x2af   : > { %v2747_v7 = vadd.f32 %v2746_v10, %v2620_v63  ;;  %v2487_v12 = vadd.f32 %v2486_v6, %v4909_v45 }
 0x2b1   : > { %v2748_v18 = vadd.f32 %v2747_v7, %v2621_v22  ;;  %v2488_v21 = vadd.f32 %v2487_v12, %v5459_v23 }
 0x2b3   : > { %v2749_v19 = vadd.f32 %v2748_v18, %v2622_v36  ;;  %v2489_v30 = vadd.f32 %v2488_v21, %v4935_v35 }
 0x2b5   : > { %v2750_v46 = vadd.f32 %v2749_v19, %v2623_v32  ;;  %v2490_v48 = vadd.f32 %v2489_v30, %v4945_v4  ;;  %v5461_v4 = vld [vmem:[#allocation32_spill] sm:$0xff] }
 0x2b6   : > { %v2628_v28 = vmul.f32 %v5461_v4, %v5461_v4 }
 0x2b7   : > { %v2751_v38 = vadd.f32 %v2750_v46, %v2624_v41  ;;  %v2491_v45 = vadd.f32 %v2490_v48, %v4961_v11  ;;  %v5462_v11 = vld [vmem:[#allocation33_spill] sm:$0xff] }
 0x2b8   : > { %v2629_v31 = vmul.f32 %v5462_v11, %v5462_v11 }
 0x2b9   : > { %v2752_v51 = vadd.f32 %v2751_v38, %v2625_v25  ;;  %v2492_v59 = vadd.f32 %v2491_v45, %v5460_v50 }
 0x2bb   : > { %v2753_v2 = vadd.f32 %v2752_v51, %v2626_v61  ;;  %v2493_v35 = vadd.f32 %v2492_v59, %v4985_v5 }
 0x2bd   : > { %v2754_v9 = vadd.f32 %v2753_v2, %v2627_v8  ;;  %v2494_v52 = vadd.f32 %v2493_v35, %v5461_v4 }
 0x2bf   : > { %v2755_v20 = vadd.f32 %v2754_v9, %v2628_v28  ;;  %v2495_v17 = vadd.f32 %v2494_v52, %v5462_v11 }
 0x2c1   : > { %v2756_v33 = vadd.f32 %v2755_v20, %v2629_v31  ;;  %v2496_v15 = vadd.f32 %v2495_v17, %v5463_v42 }
 0x2c3   : > { %v2757_v24 = vadd.f32 %v2756_v33, %v2630_v43  ;;  %v2497_v5 = vadd.f32 %v2496_v15, %v5023_v34 }
 0x2c5   : > { %v2758_v55 = vadd.f32 %v2757_v24, %v2631_v14  ;;  %v2498_v26 = vadd.f32 %v2497_v5, %v5464_v60 }
 0x2c7   : > { %v2759_v57 = vadd.f32 %v2758_v55, %v2632_v3  ;;  %v2499_v13 = vadd.f32 %v2498_v26, %v5032_v39  ;;  %v2636_v39 = vmul.f32 %v5042_v29, %v5042_v29 }
 0x2c9   : > { %v2760_v56 = vadd.f32 %v2759_v57, %v2633_v16  ;;  %v2500_v1 = vadd.f32 %v2499_v13, %v5034_v49 }
 0x2cb   : > { %v2761_v34 = vadd.f32 %v2760_v56, %v2634_v27  ;;  %v2501_v40 = vadd.f32 %v2500_v1, %v5040_v47 }
 0x2cd   : > { %v2762_v44 = vadd.f32 %v2761_v34, %v2635_v37  ;;  %v2502_v62 = vadd.f32 %v2501_v40, %v5042_v29 }
 0x2cf   : > { %v2503_v53 = vrot.slane %v2502_v62, 4  ;;  %v2763_v54 = vadd.f32 %v2762_v44, %v2636_v39 }
 0x2d1   : > { %v2504_v58 = vadd.f32 %v2503_v53, %v2502_v62  ;;  %v2764_v10 = vrot.slane %v2763_v54, 4 }
 0x2d3   : > { %v2505_v49 = vrot.slane %v2504_v58, 2  ;;  %v2765_v0 = vadd.f32 %v2764_v10, %v2763_v54 }
 0x2d5   : > { %v2506_v6 = vadd.f32 %v2505_v49, %v2504_v58  ;;  %v2766_v63 = vrot.slane %v2765_v0, 2 }
 0x2d7   : > { %v2507_v47 = vrot.slane %v2506_v6, 1  ;;  %v2767_v7 = vadd.f32 %v2766_v63, %v2765_v0 }
 0x2d9   : > { %v2508_v29 = vadd.f32 %v2507_v47, %v2506_v6  ;;  %v2768_v12 = vrot.slane %v2767_v7, 1 }
 0x2db   : > { %v2769_v22 = vadd.f32 %v2768_v12, %v2767_v7  ;;  %2770 = vst [vmem:[%s282_s9] sm:$0xff] %v2508_v29 }
 0x2dc   : > { %4224 = shalt.err (!%p4221_p6)
}
 0x2dd   : > { %s4225_s7 = scalar_lea.hbm %s5281_s1, 128  ;;  %s4229_s9 = scalar_lea.hbm %s5365_s3, 256 }
 0x2de   : > { %p4226_p9 = scmp.ne.s32.totalorder %s5281_s1, %s4225_s7  ;;  %p4230_p1 = scmp.lt.s32.totalorder %s5281_s1, %s5365_s3 }
 0x2df   : > { %p4231_p8 = scmp.lt.s32.totalorder %s4229_s9, %s4225_s7 }
 0x2e0   : > { %p4227_p13 = pnand %p4226_p9, %p4449_p0 }
 0x2e1   : > { %p4232_p4 = por %p4231_p8, %p4230_p1 }
 0x2e2   : > { %p4228_p11 = pneg %p4227_p13 }
 0x2e4   : > { %p4233_p10 = pnand %p4232_p4, %p4228_p11 }
 0x2e6   : > { %4236 = shalt.err (!%p4233_p10)
}
 0x2e7   : > { %3840 = dma.vmem_to_hbm [thread:$0]  (%p4449_p0), %s5283_s27, 128, %s5281_s1, %s5292_s22   ;;  %2771 = vst [vmem:[%s5275_s10] sm:$0xff] %v2769_v22 }
 0x2e8   : > { %s4237_s18 = scalar_lea.vmem %s5290_s14, 128  ;;  %s4338_s21 = smov [#allocation10]  }
 0x2e9   : > { %p4238_p12 = scmp.ne.s32.totalorder %s5290_s14, %s4237_s18  ;;  %s4241_s23 = sshll.u32 %s4338_s21, 4  ;;  %s4242_s23 = int_to_ptr.vmem [resolvable:$false] %s4241_s23 }
 0x2ea   : > { %s4243_s25 = scalar_lea.vmem %s4242_s23, 256  ;;  %p4244_p7 = scmp.lt.s32.totalorder %s5290_s14, %s4242_s23 }
 0x2eb   : > { %p4239_p3 = pnand %p4238_p12, %p4449_p0  ;;  %p4245_p2 = scmp.lt.s32.totalorder %s4243_s25, %s4237_s18 }
 0x2ed   : > { %p4240_p5 = pneg %p4239_p3  ;;  %p4246_p6 = por %p4245_p2, %p4244_p7 }
 0x2ef   : > { %p4247_p9 = pnand %p4246_p6, %p4240_p5 }
 0x2f1   : > { %4250 = shalt.err (!%p4247_p9)
}
 0x2f2   : > { %s4251_s27 = scalar_lea.hbm %s5288_s30, 128  ;;  %s4255_s5 = scalar_lea.hbm %s5366_s4, 256 }
 0x2f3   : > { %p4252_p13 = scmp.ne.s32.totalorder %s5288_s30, %s4251_s27  ;;  %p4256_p8 = scmp.lt.s32.totalorder %s5288_s30, %s5366_s4 }
 0x2f4   : > { %p4257_p4 = scmp.lt.s32.totalorder %s4255_s5, %s4251_s27 }
 0x2f5   : > { %p4253_p11 = pnand %p4252_p13, %p4449_p0 }
 0x2f6   : > { %p4258_p10 = por %p4257_p4, %p4256_p8 }
 0x2f7   : > { %p4254_p1 = pneg %p4253_p11 }
 0x2f9   : > { %p4259_p12 = pnand %p4258_p10, %p4254_p1 }
 0x2fb   : > { %4262 = shalt.err (!%p4259_p12)
}
 0x2fc   : > { %3841 = dma.vmem_to_hbm [thread:$0]  (%p4449_p0), %s5290_s14, 128, %s5288_s30, %s5292_s22  }
 0x2fd PF: > { %s2840_s8 = sand.u32 1, %s4305_s15   ;;  %p5465_p3 = scmp.ne.s32.totalorder %s5413_s24, 0 }
 0x2fe   : > { %p5466_p5 = scmp.ge.s32.totalorder %s4325_s20, 2  ;;  %s2841_s12 = scalar_lea.sflag [#allocation4], %s2840_s8 }
 0x300   : > { %p3854_p7 = pnand %p5466_p5, %p5465_p3 }
 0x302   : > { %p3855_p2 = pneg %p3854_p7 }
 0x304   : > { %4296 = dma.done.wait (%p3855_p2), %s2841_s12, 8192  }
 0x305   : > { %4298 = vsyncadd (%p3855_p2), %s2841_s12, 4294959104  ;;  %s5467_s9 = sadd.s32 4294967294, %s4325_s20  }
 0x306   : > { %s2849_s13 = sand.u32 1, %s5467_s9  }
 0x307   : > { %s2850_s11 = scalar_lea.sflag [#allocation9], %s2849_s13 }
 0x308   : > { %4300 = dma.done.wait (%p3855_p2), %s2850_s11, 256  }
 0x309   : > { %4302 = vsyncadd (%p3855_p2), %s2850_s11, 4294967040  ;;  %s25_s20 = sadd.s32 1, %s4325_s20   ;;  %s5468_s15 = smov %s4309_s16 }
 0x30a   : > { %p22_p0 = scmp.ge.s32.totalorder %s25_s20, 4   ;;  %s5469_s16 = smov %s4313_s17 }
 0x30b   : > { %s5470_s17 = smov %s4458_s26  ;;  %s5471_s18 = smov %s4321_s19 }
 0x30c   : > { %s5472_s19 = smov %s5474_s29  ;;  %24 = sbr.rel (!%p22_p0) target bundleno = 11 (0xb), region = 110 }
 0x311   :  { %2864 = vsyncpa [#allocation3], 1 }
 0x312   :  { %2866 = vsyncpa [#allocation3 + $0x1], 1 }
 0x313   :  { %2867 = vsyncpa [#allocation6], 1 }
 0x314   :  { %2868 = vsyncpa [#allocation4], 1 }
 0x315   :  { %2870 = vsyncpa [#allocation4 + $0x1], 1 }
 0x316   :  { %2871 = vsyncpa [#allocation9], 1 }
 0x317   :  { %2873 = vsyncpa [#allocation9 + $0x1], 1 }

</bundles_post_ra>
